<compile_context>
chip_gen: v5e
topology: v5e:2x2
jax: 0.10.0
libtpu: 0.0.40
codegen_flags: <defaults>
</compile_context>

<pallas_src>
import functools

import jax
import jax.numpy as jnp
from jax.experimental import pallas as pl
from jax.experimental.pallas import tpu as pltpu

IN_DIM = 500
HID_DIM = 800
OUT_DIM = 28


def _round_up(x, m):
    return ((x + m - 1) // m) * m


# ----------------------------- Pallas kernel -----------------------------

def _mlp_kernel(x_ref, w1_ref, b1_ref, w2_ref, b2_ref, o_ref):
    """Fused 2-layer MLP: o = relu(x @ W1 + b1) @ W2 + b2 (single row-tile per grid step)."""
    h = jnp.dot(x_ref[...], w1_ref[...], preferred_element_type=jnp.float32)
    h = jnp.maximum(h + b1_ref[...], 0.0)
    y = jnp.dot(h, w2_ref[...], preferred_element_type=jnp.float32)
    o_ref[...] = (y + b2_ref[...]).astype(o_ref.dtype)


# ----------------------------- wrapper -----------------------------

def attacker_forward(x, params):
    """x: [M, 500] float32 -> [M, 28] float32."""
    x = x.astype(jnp.float32)
    m, k = x.shape
    assert k == IN_DIM

    # lane-dense padded sizes
    kp = _round_up(IN_DIM, 128)      # 512
    hp = _round_up(HID_DIM, 128)     # 896
    np_ = _round_up(OUT_DIM, 128)    # 128

    # row tiling
    tm = 128 if m >= 128 else _round_up(m, 8)
    mp = _round_up(m, tm)

    # zero-pad inputs / params (glue; exact math since pads are zero)
    xp = jnp.pad(x, ((0, mp - m), (0, kp - IN_DIM)))
    w1 = jnp.pad(params["w1"].astype(jnp.float32),
                 ((0, kp - IN_DIM), (0, hp - HID_DIM)))
    b1 = jnp.pad(params["b1"].astype(jnp.float32),
                 ((0, hp - HID_DIM),)).reshape(1, hp)
    w2 = jnp.pad(params["w2"].astype(jnp.float32),
                 ((0, hp - HID_DIM), (0, np_ - OUT_DIM)))
    b2 = jnp.pad(params["b2"].astype(jnp.float32),
                 ((0, np_ - OUT_DIM),)).reshape(1, np_)

    grid = (mp // tm,)
    out = pl.pallas_call(
        _mlp_kernel,
        out_shape=jax.ShapeDtypeStruct((mp, np_), jnp.float32),
        grid_spec=pltpu.PrefetchScalarGridSpec(
            num_scalar_prefetch=0,
            grid=grid,
            in_specs=[
                pl.BlockSpec((tm, kp), lambda i: (i, 0)),   # x row tile
                pl.BlockSpec((kp, hp), lambda i: (0, 0)),   # W1 (resident)
                pl.BlockSpec((1, hp), lambda i: (0, 0)),    # b1
                pl.BlockSpec((hp, np_), lambda i: (0, 0)),  # W2 (resident)
                pl.BlockSpec((1, np_), lambda i: (0, 0)),   # b2
            ],
            out_specs=pl.BlockSpec((tm, np_), lambda i: (i, 0)),
        ),
        compiler_params=pltpu.CompilerParams(
            dimension_semantics=("parallel",),
            vmem_limit_bytes=64 * 1024 * 1024,
        ),
        cost_estimate=pl.CostEstimate(
            flops=2 * mp * kp * hp + 2 * mp * hp * np_,
            transcendentals=0,
            bytes_accessed=4 * (mp * kp + kp * hp + hp * np_ + mp * np_),
        ),
    )(xp, w1, b1, w2, b2)

    return out[:m, :OUT_DIM]


# ----------------------------- params -----------------------------

def init_params(key):
    k1, k2, k3, k4 = jax.random.split(key, 4)
    # weights stored as [in, out] (transpose of PyTorch's [out, in]); same forward math.
    return {
        "w1": jax.random.normal(k1, (IN_DIM, HID_DIM), jnp.float32) / jnp.sqrt(IN_DIM),
        "b1": jax.random.normal(k2, (HID_DIM,), jnp.float32) * 0.01,
        "w2": jax.random.normal(k3, (HID_DIM, OUT_DIM), jnp.float32) / jnp.sqrt(HID_DIM),
        "b2": jax.random.normal(k4, (OUT_DIM,), jnp.float32) * 0.01,
    }


@jax.jit
def run(x, params):
    return attacker_forward(x, params)


if __name__ == "__main__":
    key = jax.random.PRNGKey(0)
    pkey, xkey = jax.random.split(key)
    params = init_params(pkey)

    x = jax.random.normal(xkey, (4, IN_DIM), jnp.float32)   # [batch=4, 500]

    out = run(x, params)
    out = jax.block_until_ready(out)

    # reference check (pure JAX) to make sure the fused kernel matches the module's math
    ref = jnp.maximum(x @ params["w1"] + params["b1"], 0.0) @ params["w2"] + params["b2"]
    assert out.shape == (4, OUT_DIM)
    assert bool(jnp.all(jnp.isfinite(out)))
    assert bool(jnp.allclose(out, ref, atol=1e-4, rtol=1e-4))
    print("KERNEL_OK")
</pallas_src>

<mosaic_0001>
module attributes {stable_mosaic.version = 11 : i64} {
  func.func @_mlp_kernel(%arg0: i32, %arg1: memref<8x512xf32, #tpu.memory_space<vmem>>, %arg2: memref<512x896xf32, #tpu.memory_space<vmem>>, %arg3: memref<1x896xf32, #tpu.memory_space<vmem>>, %arg4: memref<896x128xf32, #tpu.memory_space<vmem>>, %arg5: memref<1x128xf32, #tpu.memory_space<vmem>>, %arg6: memref<8x128xf32, #tpu.memory_space<vmem>>) attributes {dimension_semantics = [#tpu.dimension_semantics<parallel>], iteration_bounds = array<i64: 1>, scalar_prefetch = 0 : i64, scratch_operands = 0 : i64, tpu.core_type = #tpu.core_type<tc>, window_params = [{transform_indices = @transform_0, window_bounds = array<i64: 8, 512>}, {pipeline_mode = #tpu.pipeline_mode<synchronous>, transform_indices = @transform_1, window_bounds = array<i64: 512, 896>}, {pipeline_mode = #tpu.pipeline_mode<synchronous>, transform_indices = @transform_2, window_bounds = array<i64: 1, 896>}, {pipeline_mode = #tpu.pipeline_mode<synchronous>, transform_indices = @transform_3, window_bounds = array<i64: 896, 128>}, {pipeline_mode = #tpu.pipeline_mode<synchronous>, transform_indices = @transform_4, window_bounds = array<i64: 1, 128>}, {transform_indices = @transform_5, window_bounds = array<i64: 8, 128>}]} {
    %c0 = arith.constant 0 : index
    %c0_0 = arith.constant 0 : index
    %0 = vector.load %arg1[%c0, %c0_0] : memref<8x512xf32, #tpu.memory_space<vmem>>, vector<8x512xf32>
    %c0_1 = arith.constant 0 : index
    %c0_2 = arith.constant 0 : index
    %1 = vector.load %arg2[%c0_1, %c0_2] : memref<512x896xf32, #tpu.memory_space<vmem>>, vector<512x896xf32>
    %cst = arith.constant dense<0.000000e+00> : vector<8x896xf32>
    %2 = tpu.matmul %0, %1, %cst {dimension_numbers = #tpu.dot_dimension_numbers<[1], [0], [0], [1], [0, 0, 1, 1], [], []>} : vector<8x512xf32>, vector<512x896xf32>, vector<8x896xf32> -> vector<8x896xf32>
    %c0_3 = arith.constant 0 : index
    %c0_4 = arith.constant 0 : index
    %3 = vector.load %arg3[%c0_3, %c0_4] : memref<1x896xf32, #tpu.memory_space<vmem>>, vector<1x896xf32>
    %4 = vector.broadcast %3 : vector<1x896xf32> to vector<8x896xf32>
    %5 = arith.addf %2, %4 : vector<8x896xf32>
    %cst_5 = arith.constant 0.000000e+00 : f32
    %6 = vector.broadcast %cst_5 : f32 to vector<8x896xf32>
    %7 = arith.maximumf %5, %6 : vector<8x896xf32>
    %c0_6 = arith.constant 0 : index
    %c0_7 = arith.constant 0 : index
    %8 = vector.load %arg4[%c0_6, %c0_7] : memref<896x128xf32, #tpu.memory_space<vmem>>, vector<896x128xf32>
    %cst_8 = arith.constant dense<0.000000e+00> : vector<8x128xf32>
    %9 = tpu.matmul %7, %8, %cst_8 {dimension_numbers = #tpu.dot_dimension_numbers<[1], [0], [0], [1], [0, 0, 1, 1], [], []>} : vector<8x896xf32>, vector<896x128xf32>, vector<8x128xf32> -> vector<8x128xf32>
    %c0_9 = arith.constant 0 : index
    %c0_10 = arith.constant 0 : index
    %10 = vector.load %arg5[%c0_9, %c0_10] : memref<1x128xf32, #tpu.memory_space<vmem>>, vector<1x128xf32>
    %11 = vector.broadcast %10 : vector<1x128xf32> to vector<8x128xf32>
    %12 = arith.addf %9, %11 : vector<8x128xf32>
    %c0_11 = arith.constant 0 : index
    %c0_12 = arith.constant 0 : index
    %13 = vector.load %arg6[%c0_11, %c0_12] : memref<8x128xf32, #tpu.memory_space<vmem>>, vector<8x128xf32>
    tpu.vector_store %arg6[%c0_11, %c0_12], %12 {strides = array<i32>} : memref<8x128xf32, #tpu.memory_space<vmem>>, vector<8x128xf32>,
    return
  }
  func.func @transform_0(%arg0: i32) -> (i32, i32) {
    %c0_i32 = arith.constant 0 : i32
    %c0_i32_0 = arith.constant 0 : i32
    return %arg0, %c0_i32 : i32, i32
  }
  func.func @transform_1(%arg0: i32) -> (i32, i32) {
    %c0_i32 = arith.constant 0 : i32
    %c0_i32_0 = arith.constant 0 : i32
    %c0_i32_1 = arith.constant 0 : i32
    return %c0_i32, %c0_i32_0 : i32, i32
  }
  func.func @transform_2(%arg0: i32) -> (i32, i32) {
    %c0_i32 = arith.constant 0 : i32
    %c0_i32_0 = arith.constant 0 : i32
    %c0_i32_1 = arith.constant 0 : i32
    return %c0_i32, %c0_i32_0 : i32, i32
  }
  func.func @transform_3(%arg0: i32) -> (i32, i32) {
    %c0_i32 = arith.constant 0 : i32
    %c0_i32_0 = arith.constant 0 : i32
    %c0_i32_1 = arith.constant 0 : i32
    return %c0_i32, %c0_i32_0 : i32, i32
  }
  func.func @transform_4(%arg0: i32) -> (i32, i32) {
    %c0_i32 = arith.constant 0 : i32
    %c0_i32_0 = arith.constant 0 : i32
    %c0_i32_1 = arith.constant 0 : i32
    return %c0_i32, %c0_i32_0 : i32, i32
  }
  func.func @transform_5(%arg0: i32) -> (i32, i32) {
    %c0_i32 = arith.constant 0 : i32
    %c0_i32_0 = arith.constant 0 : i32
    return %arg0, %c0_i32 : i32, i32
  }
}

</mosaic_0001>

<bundles_post_ra>
// kernel: run.1
= control target key start
LH: loop header
LB: loop body
LE: loop exit
PB: predicated region body
PF: predicated region fallthrough
CT: control target
= control target key end

     0   :  { %s3138_s1 = inlined_call_operand.vmem [shape: f32[512,896], index: 1, kind: input, shape index: {}]   ;;  %s3139_s0 = inlined_call_operand.vmem [shape: f32[8,512], index: 0, kind: input, shape index: {}]   ;;  %s3140_s3 = inlined_call_operand.vmem [shape: f32[896,128], index: 3, kind: input, shape index: {}]   ;;  %s3141_s2 = inlined_call_operand.vmem [shape: f32[1,896], index: 2, kind: input, shape index: {}]   ;;  %s3142_s4 = inlined_call_operand.vmem [shape: f32[1,128], index: 4, kind: input, shape index: {}]   ;;  %s3143_s5 = inlined_call_operand.vmem [shape: f32[8,128], index: 5, kind: output, shape index: {}]  }
   0x1   :  { %v129_v0 = vld [vmem:[%s3138_s1 + $0x348] sm:$0xff]  ;;  %v122_v3 = vld [vmem:[%s3138_s1 + $0x310] sm:$0xff]  ;;  %v115_v7 = vld [vmem:[%s3138_s1 + $0x2d8] sm:$0xff] }
   0x2   :  { %v241_v1 = vld [vmem:[%s3138_s1 + $0x6c8] sm:$0xff]  ;;  %488 = vmatpush.msra.mxu0 %v129_v0  ;;  %v234_v4 = vld [vmem:[%s3138_s1 + $0x690] sm:$0xff]  ;;  %v227_v8 = vld [vmem:[%s3138_s1 + $0x658] sm:$0xff] }
   0x3   :  { %v353_v2 = vld [vmem:[%s3138_s1 + $0xa48] sm:$0xff]  ;;  %508 = vmatpush.msra.mxu1 %v241_v1  ;;  %v346_v5 = vld [vmem:[%s3138_s1 + $0xa10] sm:$0xff]  ;;  %v339_v9 = vld [vmem:[%s3138_s1 + $0x9d8] sm:$0xff] }
   0x4   :  { %528 = vmatpush.msra.mxu2 %v353_v2  ;;  %v465_v6 = vld [vmem:[%s3138_s1 + $0xdc8] sm:$0xff]  ;;  %489 = vmatpush.msra.mxu0 %v122_v3  ;;  %v458_v10 = vld [vmem:[%s3138_s1 + $0xd90] sm:$0xff]  ;;  %v108_v11 = vld [vmem:[%s3138_s1 + $0x2a0] sm:$0xff] }
   0x5   :  { %509 = vmatpush.msra.mxu1 %v234_v4  ;;  %548 = vmatpush.msra.mxu3 %v465_v6  ;;  %v220_v12 = vld [vmem:[%s3138_s1 + $0x620] sm:$0xff]  ;;  %v451_v14 = vld [vmem:[%s3138_s1 + $0xd58] sm:$0xff]  ;;  %v101_v15 = vld [vmem:[%s3138_s1 + $0x268] sm:$0xff] }
   0x6   :  { %529 = vmatpush.msra.mxu2 %v346_v5  ;;  %490 = vmatpush.msra.mxu0 %v115_v7  ;;  %v332_v13 = vld [vmem:[%s3138_s1 + $0x9a0] sm:$0xff]  ;;  %v213_v16 = vld [vmem:[%s3138_s1 + $0x5e8] sm:$0xff]  ;;  %v94_v19 = vld [vmem:[%s3138_s1 + $0x230] sm:$0xff] }
   0x7   :  { %510 = vmatpush.msra.mxu1 %v227_v8  ;;  %549 = vmatpush.msra.mxu3 %v458_v10  ;;  %v325_v17 = vld [vmem:[%s3138_s1 + $0x968] sm:$0xff]  ;;  %v444_v18 = vld [vmem:[%s3138_s1 + $0xd20] sm:$0xff]  ;;  %v206_v20 = vld [vmem:[%s3138_s1 + $0x5b0] sm:$0xff] }
   0x8   :  { %530 = vmatpush.msra.mxu2 %v339_v9  ;;  %491 = vmatpush.msra.mxu0 %v108_v11  ;;  %v318_v21 = vld [vmem:[%s3138_s1 + $0x930] sm:$0xff]  ;;  %v437_v22 = vld [vmem:[%s3138_s1 + $0xce8] sm:$0xff]  ;;  %v87_v23 = vld [vmem:[%s3138_s1 + $0x1f8] sm:$0xff] }
   0x9   :  { %511 = vmatpush.msra.mxu1 %v220_v12  ;;  %550 = vmatpush.msra.mxu3 %v451_v14  ;;  %v199_v24 = vld [vmem:[%s3138_s1 + $0x578] sm:$0xff]  ;;  %v430_v26 = vld [vmem:[%s3138_s1 + $0xcb0] sm:$0xff]  ;;  %v80_v27 = vld [vmem:[%s3138_s1 + $0x1c0] sm:$0xff] }
   0xa   :  { %531 = vmatpush.msra.mxu2 %v332_v13  ;;  %492 = vmatpush.msra.mxu0 %v101_v15  ;;  %v311_v25 = vld [vmem:[%s3138_s1 + $0x8f8] sm:$0xff]  ;;  %v192_v28 = vld [vmem:[%s3138_s1 + $0x540] sm:$0xff]  ;;  %v73_v31 = vld [vmem:[%s3138_s1 + $0x188] sm:$0xff] }
   0xb   :  { %512 = vmatpush.msra.mxu1 %v213_v16  ;;  %551 = vmatpush.msra.mxu3 %v444_v18  ;;  %v304_v29 = vld [vmem:[%s3138_s1 + $0x8c0] sm:$0xff]  ;;  %v423_v30 = vld [vmem:[%s3138_s1 + $0xc78] sm:$0xff]  ;;  %v185_v32 = vld [vmem:[%s3138_s1 + $0x508] sm:$0xff] }
   0xc   :  { %532 = vmatpush.msra.mxu2 %v325_v17  ;;  %493 = vmatpush.msra.mxu0 %v94_v19  ;;  %v297_v33 = vld [vmem:[%s3138_s1 + $0x888] sm:$0xff]  ;;  %v416_v34 = vld [vmem:[%s3138_s1 + $0xc40] sm:$0xff]  ;;  %v66_v35 = vld [vmem:[%s3138_s1 + $0x150] sm:$0xff] }
   0xd   :  { %513 = vmatpush.msra.mxu1 %v206_v20  ;;  %552 = vmatpush.msra.mxu3 %v437_v22  ;;  %v178_v36 = vld [vmem:[%s3138_s1 + $0x4d0] sm:$0xff]  ;;  %v409_v38 = vld [vmem:[%s3138_s1 + $0xc08] sm:$0xff]  ;;  %v59_v39 = vld [vmem:[%s3138_s1 + $0x118] sm:$0xff] }
   0xe   :  { %533 = vmatpush.msra.mxu2 %v318_v21  ;;  %494 = vmatpush.msra.mxu0 %v87_v23  ;;  %v290_v37 = vld [vmem:[%s3138_s1 + $0x850] sm:$0xff]  ;;  %v171_v40 = vld [vmem:[%s3138_s1 + $0x498] sm:$0xff]  ;;  %v52_v43 = vld [vmem:[%s3138_s1 + $0xe0] sm:$0xff] }
   0xf   :  { %514 = vmatpush.msra.mxu1 %v199_v24  ;;  %553 = vmatpush.msra.mxu3 %v430_v26  ;;  %v283_v41 = vld [vmem:[%s3138_s1 + $0x818] sm:$0xff]  ;;  %v402_v42 = vld [vmem:[%s3138_s1 + $0xbd0] sm:$0xff]  ;;  %v164_v44 = vld [vmem:[%s3138_s1 + $0x460] sm:$0xff] }
  0x10   :  { %534 = vmatpush.msra.mxu2 %v311_v25  ;;  %495 = vmatpush.msra.mxu0 %v80_v27  ;;  %v276_v45 = vld [vmem:[%s3138_s1 + $0x7e0] sm:$0xff]  ;;  %v395_v46 = vld [vmem:[%s3138_s1 + $0xb98] sm:$0xff]  ;;  %v45_v47 = vld [vmem:[%s3138_s1 + $0xa8] sm:$0xff] }
  0x11   :  { %515 = vmatpush.msra.mxu1 %v192_v28  ;;  %554 = vmatpush.msra.mxu3 %v423_v30  ;;  %v157_v48 = vld [vmem:[%s3138_s1 + $0x428] sm:$0xff]  ;;  %v388_v50 = vld [vmem:[%s3138_s1 + $0xb60] sm:$0xff]  ;;  %v38_v51 = vld [vmem:[%s3138_s1 + $0x70] sm:$0xff] }
  0x12   :  { %535 = vmatpush.msra.mxu2 %v304_v29  ;;  %496 = vmatpush.msra.mxu0 %v73_v31  ;;  %v269_v49 = vld [vmem:[%s3138_s1 + $0x7a8] sm:$0xff]  ;;  %v150_v52 = vld [vmem:[%s3138_s1 + $0x3f0] sm:$0xff]  ;;  %v31_v55 = vld [vmem:[%s3138_s1 + $0x38] sm:$0xff] }
  0x13   :  { %516 = vmatpush.msra.mxu1 %v185_v32  ;;  %555 = vmatpush.msra.mxu3 %v416_v34  ;;  %v262_v53 = vld [vmem:[%s3138_s1 + $0x770] sm:$0xff]  ;;  %v381_v54 = vld [vmem:[%s3138_s1 + $0xb28] sm:$0xff]  ;;  %v143_v56 = vld [vmem:[%s3138_s1 + $0x3b8] sm:$0xff] }
  0x14   :  { %536 = vmatpush.msra.mxu2 %v297_v33  ;;  %497 = vmatpush.msra.mxu0 %v66_v35  ;;  %v255_v57 = vld [vmem:[%s3138_s1 + $0x738] sm:$0xff]  ;;  %v374_v58 = vld [vmem:[%s3138_s1 + $0xaf0] sm:$0xff]  ;;  %v24_v59 = vld [vmem:[%s3138_s1] sm:$0xff] }
  0x15   :  { %517 = vmatpush.msra.mxu1 %v178_v36  ;;  %556 = vmatpush.msra.mxu3 %v409_v38  ;;  %v136_v60 = vld [vmem:[%s3138_s1 + $0x380] sm:$0xff]  ;;  %v367_v62 = vld [vmem:[%s3138_s1 + $0xab8] sm:$0xff]  ;;  %v130_v63 = vld [vmem:[%s3138_s1 + $0x350] sm:$0xff] }
  0x16   :  { %537 = vmatpush.msra.mxu2 %v290_v37  ;;  %498 = vmatpush.msra.mxu0 %v59_v39  ;;  %v248_v61 = vld [vmem:[%s3138_s1 + $0x700] sm:$0xff]  ;;  %v242_v0 = vld [vmem:[%s3138_s1 + $0x6d0] sm:$0xff]  ;;  %v123_v3 = vld [vmem:[%s3138_s1 + $0x318] sm:$0xff] }
  0x17   :  { %518 = vmatpush.msra.mxu1 %v171_v40  ;;  %557 = vmatpush.msra.mxu3 %v402_v42  ;;  %v354_v1 = vld [vmem:[%s3138_s1 + $0xa50] sm:$0xff]  ;;  %v360_v2 = vld [vmem:[%s3138_s1 + $0xa80] sm:$0xff]  ;;  %v235_v4 = vld [vmem:[%s3138_s1 + $0x698] sm:$0xff] }
  0x18   :  { %538 = vmatpush.msra.mxu2 %v283_v41  ;;  %499 = vmatpush.msra.mxu0 %v52_v43  ;;  %v347_v5 = vld [vmem:[%s3138_s1 + $0xa18] sm:$0xff]  ;;  %v466_v6 = vld [vmem:[%s3138_s1 + $0xdd0] sm:$0xff]  ;;  %v116_v7 = vld [vmem:[%s3138_s1 + $0x2e0] sm:$0xff] }
  0x19   :  { %519 = vmatpush.msra.mxu1 %v164_v44  ;;  %558 = vmatpush.msra.mxu3 %v395_v46  ;;  %v228_v8 = vld [vmem:[%s3138_s1 + $0x660] sm:$0xff]  ;;  %v459_v10 = vld [vmem:[%s3138_s1 + $0xd98] sm:$0xff]  ;;  %v109_v11 = vld [vmem:[%s3138_s1 + $0x2a8] sm:$0xff] }
  0x1a   :  { %539 = vmatpush.msra.mxu2 %v276_v45  ;;  %500 = vmatpush.msra.mxu0 %v45_v47  ;;  %v340_v9 = vld [vmem:[%s3138_s1 + $0x9e0] sm:$0xff]  ;;  %v221_v12 = vld [vmem:[%s3138_s1 + $0x628] sm:$0xff]  ;;  %v102_v15 = vld [vmem:[%s3138_s1 + $0x270] sm:$0xff] }
  0x1b   :  { %520 = vmatpush.msra.mxu1 %v157_v48  ;;  %559 = vmatpush.msra.mxu3 %v388_v50  ;;  %v333_v13 = vld [vmem:[%s3138_s1 + $0x9a8] sm:$0xff]  ;;  %v452_v14 = vld [vmem:[%s3138_s1 + $0xd60] sm:$0xff]  ;;  %v214_v16 = vld [vmem:[%s3138_s1 + $0x5f0] sm:$0xff] }
  0x1c   :  { %540 = vmatpush.msra.mxu2 %v269_v49  ;;  %501 = vmatpush.msra.mxu0 %v38_v51  ;;  %v326_v17 = vld [vmem:[%s3138_s1 + $0x970] sm:$0xff]  ;;  %v445_v18 = vld [vmem:[%s3138_s1 + $0xd28] sm:$0xff]  ;;  %v95_v19 = vld [vmem:[%s3138_s1 + $0x238] sm:$0xff] }
  0x1d   :  { %521 = vmatpush.msra.mxu1 %v150_v52  ;;  %560 = vmatpush.msra.mxu3 %v381_v54  ;;  %v207_v20 = vld [vmem:[%s3138_s1 + $0x5b8] sm:$0xff]  ;;  %v438_v22 = vld [vmem:[%s3138_s1 + $0xcf0] sm:$0xff]  ;;  %v88_v23 = vld [vmem:[%s3138_s1 + $0x200] sm:$0xff] }
  0x1e   :  { %541 = vmatpush.msra.mxu2 %v262_v53  ;;  %502 = vmatpush.msra.mxu0 %v31_v55  ;;  %v319_v21 = vld [vmem:[%s3138_s1 + $0x938] sm:$0xff]  ;;  %v200_v24 = vld [vmem:[%s3138_s1 + $0x580] sm:$0xff]  ;;  %v81_v27 = vld [vmem:[%s3138_s1 + $0x1c8] sm:$0xff] }
  0x1f   :  { %522 = vmatpush.msra.mxu1 %v143_v56  ;;  %561 = vmatpush.msra.mxu3 %v374_v58  ;;  %v312_v25 = vld [vmem:[%s3138_s1 + $0x900] sm:$0xff]  ;;  %v431_v26 = vld [vmem:[%s3138_s1 + $0xcb8] sm:$0xff]  ;;  %v193_v28 = vld [vmem:[%s3138_s1 + $0x548] sm:$0xff] }
  0x20   :  { %542 = vmatpush.msra.mxu2 %v255_v57  ;;  %503 = vmatpush.msra.mxu0 %v24_v59  ;;  %v305_v29 = vld [vmem:[%s3138_s1 + $0x8c8] sm:$0xff]  ;;  %v424_v30 = vld [vmem:[%s3138_s1 + $0xc80] sm:$0xff]  ;;  %v74_v31 = vld [vmem:[%s3138_s1 + $0x190] sm:$0xff] }
  0x21   :  { %523 = vmatpush.msra.mxu1 %v136_v60  ;;  %562 = vmatpush.msra.mxu3 %v367_v62  ;;  %v186_v32 = vld [vmem:[%s3138_s1 + $0x510] sm:$0xff]  ;;  %v417_v34 = vld [vmem:[%s3138_s1 + $0xc48] sm:$0xff]  ;;  %v67_v35 = vld [vmem:[%s3138_s1 + $0x158] sm:$0xff] }
  0x22   :  { %543 = vmatpush.msra.mxu2 %v248_v61  ;;  %568 = vmatpush.msrb.mxu0 %v130_v63  ;;  %v298_v33 = vld [vmem:[%s3138_s1 + $0x890] sm:$0xff]  ;;  %v179_v36 = vld [vmem:[%s3138_s1 + $0x4d8] sm:$0xff]  ;;  %v60_v39 = vld [vmem:[%s3138_s1 + $0x120] sm:$0xff] }
  0x23   :  { %588 = vmatpush.msrb.mxu1 %v242_v0  ;;  %563 = vmatpush.msra.mxu3 %v360_v2  ;;  %v291_v37 = vld [vmem:[%s3138_s1 + $0x858] sm:$0xff]  ;;  %v410_v38 = vld [vmem:[%s3138_s1 + $0xc10] sm:$0xff]  ;;  %v172_v40 = vld [vmem:[%s3138_s1 + $0x4a0] sm:$0xff] }
  0x24   :  { %608 = vmatpush.msrb.mxu2 %v354_v1  ;;  %569 = vmatpush.msrb.mxu0 %v123_v3  ;;  %v284_v41 = vld [vmem:[%s3138_s1 + $0x820] sm:$0xff]  ;;  %v403_v42 = vld [vmem:[%s3138_s1 + $0xbd8] sm:$0xff]  ;;  %v53_v43 = vld [vmem:[%s3138_s1 + $0xe8] sm:$0xff] }
  0x25   :  { %589 = vmatpush.msrb.mxu1 %v235_v4  ;;  %628 = vmatpush.msrb.mxu3 %v466_v6  ;;  %v165_v44 = vld [vmem:[%s3138_s1 + $0x468] sm:$0xff]  ;;  %v396_v46 = vld [vmem:[%s3138_s1 + $0xba0] sm:$0xff]  ;;  %v46_v47 = vld [vmem:[%s3138_s1 + $0xb0] sm:$0xff] }
  0x26   :  { %609 = vmatpush.msrb.mxu2 %v347_v5  ;;  %570 = vmatpush.msrb.mxu0 %v116_v7  ;;  %v277_v45 = vld [vmem:[%s3138_s1 + $0x7e8] sm:$0xff]  ;;  %v158_v48 = vld [vmem:[%s3138_s1 + $0x430] sm:$0xff]  ;;  %v39_v51 = vld [vmem:[%s3138_s1 + $0x78] sm:$0xff] }
  0x27   :  { %590 = vmatpush.msrb.mxu1 %v228_v8  ;;  %629 = vmatpush.msrb.mxu3 %v459_v10  ;;  %v270_v49 = vld [vmem:[%s3138_s1 + $0x7b0] sm:$0xff]  ;;  %v389_v50 = vld [vmem:[%s3138_s1 + $0xb68] sm:$0xff]  ;;  %v151_v52 = vld [vmem:[%s3138_s1 + $0x3f8] sm:$0xff] }
  0x28   :  { %610 = vmatpush.msrb.mxu2 %v340_v9  ;;  %571 = vmatpush.msrb.mxu0 %v109_v11  ;;  %v263_v53 = vld [vmem:[%s3138_s1 + $0x778] sm:$0xff]  ;;  %v382_v54 = vld [vmem:[%s3138_s1 + $0xb30] sm:$0xff]  ;;  %v32_v55 = vld [vmem:[%s3138_s1 + $0x40] sm:$0xff] }
  0x29   :  { %591 = vmatpush.msrb.mxu1 %v221_v12  ;;  %630 = vmatpush.msrb.mxu3 %v452_v14  ;;  %v144_v56 = vld [vmem:[%s3138_s1 + $0x3c0] sm:$0xff]  ;;  %v375_v58 = vld [vmem:[%s3138_s1 + $0xaf8] sm:$0xff]  ;;  %v25_v59 = vld [vmem:[%s3138_s1 + $0x8] sm:$0xff] }
  0x2a   :  { %611 = vmatpush.msrb.mxu2 %v333_v13  ;;  %572 = vmatpush.msrb.mxu0 %v102_v15  ;;  %v256_v57 = vld [vmem:[%s3138_s1 + $0x740] sm:$0xff]  ;;  %v137_v60 = vld [vmem:[%s3138_s1 + $0x388] sm:$0xff]  ;;  %v1745_v1 = vld [vmem:[%s3139_s0 + $0x10] sm:$0xff] }
  0x2b   :  { %592 = vmatpush.msrb.mxu1 %v214_v16  ;;  %631 = vmatpush.msrb.mxu3 %v445_v18  ;;  %v249_v61 = vld [vmem:[%s3138_s1 + $0x708] sm:$0xff]  ;;  %v368_v62 = vld [vmem:[%s3138_s1 + $0xac0] sm:$0xff]  ;;  %v131_v2 = vld [vmem:[%s3138_s1 + $0x358] sm:$0xff] }
  0x2c   :  { %612 = vmatpush.msrb.mxu2 %v326_v17  ;;  %573 = vmatpush.msrb.mxu0 %v95_v19  ;;  %v1735_v63 = vld [vmem:[%s3139_s0] sm:$0xff]  ;;  %v1740_v0 = vld [vmem:[%s3139_s0 + $0x8] sm:$0xff]  ;;  %v243_v3 = vld [vmem:[%s3138_s1 + $0x6d8] sm:$0xff] }
  0x2d   :  { %593 = vmatpush.msrb.mxu1 %v207_v20  ;;  %632 = vmatpush.msrb.mxu3 %v438_v22  ;;  %v355_v4 = vld [vmem:[%s3138_s1 + $0xa58] sm:$0xff]  ;;  %v361_v5 = vld [vmem:[%s3138_s1 + $0xa88] sm:$0xff]  ;;  %v124_v6 = vld [vmem:[%s3138_s1 + $0x320] sm:$0xff] }
  0x2e   :  { %613 = vmatpush.msrb.mxu2 %v319_v21  ;;  %574 = vmatpush.msrb.mxu0 %v88_v23  ;;  %v1768_v7 = vld [vmem:[%s3139_s0 + $0x18] sm:$0xff]  ;;  %v236_v8 = vld [vmem:[%s3138_s1 + $0x6a0] sm:$0xff]  ;;  %v117_v11 = vld [vmem:[%s3138_s1 + $0x2e8] sm:$0xff] }
  0x2f   :  { %594 = vmatpush.msrb.mxu1 %v200_v24  ;;  %633 = vmatpush.msrb.mxu3 %v431_v26  ;;  %v348_v9 = vld [vmem:[%s3138_s1 + $0xa20] sm:$0xff]  ;;  %v467_v10 = vld [vmem:[%s3138_s1 + $0xdd8] sm:$0xff]  ;;  %v229_v12 = vld [vmem:[%s3138_s1 + $0x668] sm:$0xff] }
  0x30   :  { %614 = vmatpush.msrb.mxu2 %v312_v25  ;;  %575 = vmatpush.msrb.mxu0 %v81_v27  ;;  %v341_v13 = vld [vmem:[%s3138_s1 + $0x9e8] sm:$0xff]  ;;  %v460_v14 = vld [vmem:[%s3138_s1 + $0xda0] sm:$0xff]  ;;  %v110_v15 = vld [vmem:[%s3138_s1 + $0x2b0] sm:$0xff] }
  0x31   :  { %595 = vmatpush.msrb.mxu1 %v193_v28  ;;  %634 = vmatpush.msrb.mxu3 %v424_v30  ;;  %v222_v16 = vld [vmem:[%s3138_s1 + $0x630] sm:$0xff]  ;;  %v453_v18 = vld [vmem:[%s3138_s1 + $0xd68] sm:$0xff]  ;;  %v103_v19 = vld [vmem:[%s3138_s1 + $0x278] sm:$0xff] }
  0x32   :  { %615 = vmatpush.msrb.mxu2 %v305_v29  ;;  %576 = vmatpush.msrb.mxu0 %v74_v31  ;;  %v334_v17 = vld [vmem:[%s3138_s1 + $0x9b0] sm:$0xff]  ;;  %v215_v20 = vld [vmem:[%s3138_s1 + $0x5f8] sm:$0xff]  ;;  %v96_v23 = vld [vmem:[%s3138_s1 + $0x240] sm:$0xff] }
  0x33   :  { %596 = vmatpush.msrb.mxu1 %v186_v32  ;;  %635 = vmatpush.msrb.mxu3 %v417_v34  ;;  %v327_v21 = vld [vmem:[%s3138_s1 + $0x978] sm:$0xff]  ;;  %v446_v22 = vld [vmem:[%s3138_s1 + $0xd30] sm:$0xff]  ;;  %v208_v24 = vld [vmem:[%s3138_s1 + $0x5c0] sm:$0xff] }
  0x34   :  { %616 = vmatpush.msrb.mxu2 %v298_v33  ;;  %577 = vmatpush.msrb.mxu0 %v67_v35  ;;  %v320_v25 = vld [vmem:[%s3138_s1 + $0x940] sm:$0xff]  ;;  %v439_v26 = vld [vmem:[%s3138_s1 + $0xcf8] sm:$0xff]  ;;  %v89_v27 = vld [vmem:[%s3138_s1 + $0x208] sm:$0xff] }
  0x35   :  { %597 = vmatpush.msrb.mxu1 %v179_v36  ;;  %636 = vmatpush.msrb.mxu3 %v410_v38  ;;  %v201_v28 = vld [vmem:[%s3138_s1 + $0x588] sm:$0xff]  ;;  %v432_v30 = vld [vmem:[%s3138_s1 + $0xcc0] sm:$0xff]  ;;  %v82_v31 = vld [vmem:[%s3138_s1 + $0x1d0] sm:$0xff] }
  0x36   :  { %617 = vmatpush.msrb.mxu2 %v291_v37  ;;  %578 = vmatpush.msrb.mxu0 %v60_v39  ;;  %v313_v29 = vld [vmem:[%s3138_s1 + $0x908] sm:$0xff]  ;;  %v194_v32 = vld [vmem:[%s3138_s1 + $0x550] sm:$0xff]  ;;  %v75_v35 = vld [vmem:[%s3138_s1 + $0x198] sm:$0xff] }
  0x37   :  { %598 = vmatpush.msrb.mxu1 %v172_v40  ;;  %637 = vmatpush.msrb.mxu3 %v403_v42  ;;  %v306_v33 = vld [vmem:[%s3138_s1 + $0x8d0] sm:$0xff]  ;;  %v425_v34 = vld [vmem:[%s3138_s1 + $0xc88] sm:$0xff]  ;;  %v187_v36 = vld [vmem:[%s3138_s1 + $0x518] sm:$0xff] }
  0x38   :  { %618 = vmatpush.msrb.mxu2 %v284_v41  ;;  %579 = vmatpush.msrb.mxu0 %v53_v43  ;;  %v299_v37 = vld [vmem:[%s3138_s1 + $0x898] sm:$0xff]  ;;  %v418_v38 = vld [vmem:[%s3138_s1 + $0xc50] sm:$0xff]  ;;  %v68_v39 = vld [vmem:[%s3138_s1 + $0x160] sm:$0xff] }
  0x39   :  { %599 = vmatpush.msrb.mxu1 %v165_v44  ;;  %638 = vmatpush.msrb.mxu3 %v396_v46  ;;  %v180_v40 = vld [vmem:[%s3138_s1 + $0x4e0] sm:$0xff]  ;;  %v411_v42 = vld [vmem:[%s3138_s1 + $0xc18] sm:$0xff]  ;;  %v61_v43 = vld [vmem:[%s3138_s1 + $0x128] sm:$0xff] }
  0x3a   :  { %619 = vmatpush.msrb.mxu2 %v277_v45  ;;  %580 = vmatpush.msrb.mxu0 %v46_v47  ;;  %v292_v41 = vld [vmem:[%s3138_s1 + $0x860] sm:$0xff]  ;;  %v173_v44 = vld [vmem:[%s3138_s1 + $0x4a8] sm:$0xff]  ;;  %v54_v47 = vld [vmem:[%s3138_s1 + $0xf0] sm:$0xff] }
  0x3b   :  { %600 = vmatpush.msrb.mxu1 %v158_v48  ;;  %639 = vmatpush.msrb.mxu3 %v389_v50  ;;  %v285_v45 = vld [vmem:[%s3138_s1 + $0x828] sm:$0xff]  ;;  %v404_v46 = vld [vmem:[%s3138_s1 + $0xbe0] sm:$0xff]  ;;  %v166_v48 = vld [vmem:[%s3138_s1 + $0x470] sm:$0xff] }
  0x3c   :  { %620 = vmatpush.msrb.mxu2 %v270_v49  ;;  %581 = vmatpush.msrb.mxu0 %v39_v51  ;;  %v278_v49 = vld [vmem:[%s3138_s1 + $0x7f0] sm:$0xff]  ;;  %v397_v50 = vld [vmem:[%s3138_s1 + $0xba8] sm:$0xff]  ;;  %v47_v51 = vld [vmem:[%s3138_s1 + $0xb8] sm:$0xff] }
  0x3d   :  { %601 = vmatpush.msrb.mxu1 %v151_v52  ;;  %640 = vmatpush.msrb.mxu3 %v382_v54  ;;  %v159_v52 = vld [vmem:[%s3138_s1 + $0x438] sm:$0xff]  ;;  %v390_v54 = vld [vmem:[%s3138_s1 + $0xb70] sm:$0xff] }
  0x3e   :  { %621 = vmatpush.msrb.mxu2 %v263_v53  ;;  %582 = vmatpush.msrb.mxu0 %v32_v55  ;;  %v271_v53 = vld [vmem:[%s3138_s1 + $0x7b8] sm:$0xff]  ;;  %v40_v55 = vld [vmem:[%s3138_s1 + $0x80] sm:$0xff] }
  0x3f   :  { %602 = vmatpush.msrb.mxu1 %v144_v56  ;;  %641 = vmatpush.msrb.mxu3 %v375_v58  ;;  %v152_v56 = vld [vmem:[%s3138_s1 + $0x400] sm:$0xff]  ;;  %v383_v58 = vld [vmem:[%s3138_s1 + $0xb38] sm:$0xff] }
  0x40   :  { %622 = vmatpush.msrb.mxu2 %v256_v57  ;;  %583 = vmatpush.msrb.mxu0 %v25_v59  ;;  %v264_v57 = vld [vmem:[%s3138_s1 + $0x780] sm:$0xff]  ;;  %v33_v59 = vld [vmem:[%s3138_s1 + $0x48] sm:$0xff] }
  0x41   :  { %603 = vmatpush.msrb.mxu1 %v137_v60  ;;  %642 = vmatpush.msrb.mxu3 %v368_v62  ;;  %v145_v60 = vld [vmem:[%s3138_s1 + $0x3c8] sm:$0xff]  ;;  %v376_v62 = vld [vmem:[%s3138_s1 + $0xb00] sm:$0xff] }
  0x42   :  { %623 = vmatpush.msrb.mxu2 %v249_v61  ;;  %504 = vmatmul.f32.vlgmr.msra.gmra.mxu0 %v1735_v63  ;;  %v257_v61 = vld [vmem:[%s3138_s1 + $0x748] sm:$0xff] }
  0x43   :  { %524 = vmatmul.f32.vlgmr.msra.gmra.mxu1 %v1740_v0  ;;  %544 = vmatmul.f32.vlgmr.msra.gmra.mxu2 %v1745_v1 }
  0x44   :  { %648 = vmatpush.msra.mxu0 %v131_v2  ;;  %668 = vmatpush.msra.mxu1 %v243_v3  ;;  %v26_v2 = vld [vmem:[%s3138_s1 + $0x10] sm:$0xff] }
  0x45   :  { %688 = vmatpush.msra.mxu2 %v355_v4  ;;  %643 = vmatpush.msrb.mxu3 %v361_v5  ;;  %v138_v3 = vld [vmem:[%s3138_s1 + $0x390] sm:$0xff]  ;;  %v369_v5 = vld [vmem:[%s3138_s1 + $0xac8] sm:$0xff] }
  0x46   :  { %649 = vmatpush.msra.mxu0 %v124_v6  ;;  %564 = vmatmul.f32.vlgmr.msra.gmra.mxu3 %v1768_v7  ;;  %v250_v4 = vld [vmem:[%s3138_s1 + $0x710] sm:$0xff]  ;;  %v132_v6 = vld [vmem:[%s3138_s1 + $0x360] sm:$0xff] }
  0x47   :  { %669 = vmatpush.msra.mxu1 %v236_v8  ;;  %689 = vmatpush.msra.mxu2 %v348_v9  ;;  %v244_v8 = vld [vmem:[%s3138_s1 + $0x6e0] sm:$0xff] }
  0x48   :  { %708 = vmatpush.msra.mxu3 %v467_v10  ;;  %650 = vmatpush.msra.mxu0 %v117_v11  ;;  %v356_v9 = vld [vmem:[%s3138_s1 + $0xa60] sm:$0xff]  ;;  %v362_v10 = vld [vmem:[%s3138_s1 + $0xa90] sm:$0xff]  ;;  %v125_v11 = vld [vmem:[%s3138_s1 + $0x328] sm:$0xff] }
  0x49   :  { %670 = vmatpush.msra.mxu1 %v229_v12  ;;  %690 = vmatpush.msra.mxu2 %v341_v13  ;;  %v237_v12 = vld [vmem:[%s3138_s1 + $0x6a8] sm:$0xff] }
  0x4a   :  { %709 = vmatpush.msra.mxu3 %v460_v14  ;;  %651 = vmatpush.msra.mxu0 %v110_v15  ;;  %v349_v13 = vld [vmem:[%s3138_s1 + $0xa28] sm:$0xff]  ;;  %v468_v14 = vld [vmem:[%s3138_s1 + $0xde0] sm:$0xff]  ;;  %v118_v15 = vld [vmem:[%s3138_s1 + $0x2f0] sm:$0xff] }
  0x4b   :  { %671 = vmatpush.msra.mxu1 %v222_v16  ;;  %691 = vmatpush.msra.mxu2 %v334_v17  ;;  %v230_v16 = vld [vmem:[%s3138_s1 + $0x670] sm:$0xff] }
  0x4c   :  { %710 = vmatpush.msra.mxu3 %v453_v18  ;;  %652 = vmatpush.msra.mxu0 %v103_v19  ;;  %v342_v17 = vld [vmem:[%s3138_s1 + $0x9f0] sm:$0xff]  ;;  %v461_v18 = vld [vmem:[%s3138_s1 + $0xda8] sm:$0xff]  ;;  %v111_v19 = vld [vmem:[%s3138_s1 + $0x2b8] sm:$0xff] }
  0x4d   :  { %672 = vmatpush.msra.mxu1 %v215_v20  ;;  %692 = vmatpush.msra.mxu2 %v327_v21  ;;  %v223_v20 = vld [vmem:[%s3138_s1 + $0x638] sm:$0xff] }
  0x4e   :  { %711 = vmatpush.msra.mxu3 %v446_v22  ;;  %653 = vmatpush.msra.mxu0 %v96_v23  ;;  %v335_v21 = vld [vmem:[%s3138_s1 + $0x9b8] sm:$0xff]  ;;  %v454_v22 = vld [vmem:[%s3138_s1 + $0xd70] sm:$0xff]  ;;  %v104_v23 = vld [vmem:[%s3138_s1 + $0x280] sm:$0xff] }
  0x4f   :  { %673 = vmatpush.msra.mxu1 %v208_v24  ;;  %693 = vmatpush.msra.mxu2 %v320_v25  ;;  %v216_v24 = vld [vmem:[%s3138_s1 + $0x600] sm:$0xff] }
  0x50   :  { %712 = vmatpush.msra.mxu3 %v439_v26  ;;  %654 = vmatpush.msra.mxu0 %v89_v27  ;;  %v328_v25 = vld [vmem:[%s3138_s1 + $0x980] sm:$0xff]  ;;  %v447_v26 = vld [vmem:[%s3138_s1 + $0xd38] sm:$0xff]  ;;  %v97_v27 = vld [vmem:[%s3138_s1 + $0x248] sm:$0xff] }
  0x51   :  { %674 = vmatpush.msra.mxu1 %v201_v28  ;;  %694 = vmatpush.msra.mxu2 %v313_v29  ;;  %v209_v28 = vld [vmem:[%s3138_s1 + $0x5c8] sm:$0xff] }
  0x52   :  { %713 = vmatpush.msra.mxu3 %v432_v30  ;;  %655 = vmatpush.msra.mxu0 %v82_v31  ;;  %v321_v29 = vld [vmem:[%s3138_s1 + $0x948] sm:$0xff]  ;;  %v440_v30 = vld [vmem:[%s3138_s1 + $0xd00] sm:$0xff]  ;;  %v90_v31 = vld [vmem:[%s3138_s1 + $0x210] sm:$0xff] }
  0x53   :  { %675 = vmatpush.msra.mxu1 %v194_v32  ;;  %695 = vmatpush.msra.mxu2 %v306_v33  ;;  %v202_v32 = vld [vmem:[%s3138_s1 + $0x590] sm:$0xff] }
  0x54   :  { %714 = vmatpush.msra.mxu3 %v425_v34  ;;  %656 = vmatpush.msra.mxu0 %v75_v35  ;;  %v314_v33 = vld [vmem:[%s3138_s1 + $0x910] sm:$0xff]  ;;  %v433_v34 = vld [vmem:[%s3138_s1 + $0xcc8] sm:$0xff]  ;;  %v83_v35 = vld [vmem:[%s3138_s1 + $0x1d8] sm:$0xff] }
  0x55   :  { %676 = vmatpush.msra.mxu1 %v187_v36  ;;  %696 = vmatpush.msra.mxu2 %v299_v37  ;;  %v195_v36 = vld [vmem:[%s3138_s1 + $0x558] sm:$0xff] }
  0x56   :  { %715 = vmatpush.msra.mxu3 %v418_v38  ;;  %657 = vmatpush.msra.mxu0 %v68_v39  ;;  %v307_v37 = vld [vmem:[%s3138_s1 + $0x8d8] sm:$0xff]  ;;  %v426_v38 = vld [vmem:[%s3138_s1 + $0xc90] sm:$0xff]  ;;  %v76_v39 = vld [vmem:[%s3138_s1 + $0x1a0] sm:$0xff] }
  0x57   :  { %677 = vmatpush.msra.mxu1 %v180_v40  ;;  %697 = vmatpush.msra.mxu2 %v292_v41  ;;  %v188_v40 = vld [vmem:[%s3138_s1 + $0x520] sm:$0xff] }
  0x58   :  { %716 = vmatpush.msra.mxu3 %v411_v42  ;;  %658 = vmatpush.msra.mxu0 %v61_v43  ;;  %v300_v41 = vld [vmem:[%s3138_s1 + $0x8a0] sm:$0xff]  ;;  %v419_v42 = vld [vmem:[%s3138_s1 + $0xc58] sm:$0xff]  ;;  %v69_v43 = vld [vmem:[%s3138_s1 + $0x168] sm:$0xff] }
  0x59   :  { %678 = vmatpush.msra.mxu1 %v173_v44  ;;  %698 = vmatpush.msra.mxu2 %v285_v45  ;;  %v181_v44 = vld [vmem:[%s3138_s1 + $0x4e8] sm:$0xff] }
  0x5a   :  { %717 = vmatpush.msra.mxu3 %v404_v46  ;;  %659 = vmatpush.msra.mxu0 %v54_v47  ;;  %v293_v45 = vld [vmem:[%s3138_s1 + $0x868] sm:$0xff]  ;;  %v412_v46 = vld [vmem:[%s3138_s1 + $0xc20] sm:$0xff]  ;;  %v62_v47 = vld [vmem:[%s3138_s1 + $0x130] sm:$0xff] }
  0x5b   :  { %679 = vmatpush.msra.mxu1 %v166_v48  ;;  %699 = vmatpush.msra.mxu2 %v278_v49  ;;  %v174_v48 = vld [vmem:[%s3138_s1 + $0x4b0] sm:$0xff] }
  0x5c   :  { %718 = vmatpush.msra.mxu3 %v397_v50  ;;  %660 = vmatpush.msra.mxu0 %v47_v51  ;;  %v286_v49 = vld [vmem:[%s3138_s1 + $0x830] sm:$0xff]  ;;  %v405_v50 = vld [vmem:[%s3138_s1 + $0xbe8] sm:$0xff]  ;;  %v55_v51 = vld [vmem:[%s3138_s1 + $0xf8] sm:$0xff] }
  0x5d   :  { %680 = vmatpush.msra.mxu1 %v159_v52  ;;  %700 = vmatpush.msra.mxu2 %v271_v53  ;;  %v167_v52 = vld [vmem:[%s3138_s1 + $0x478] sm:$0xff] }
  0x5e   :  { %719 = vmatpush.msra.mxu3 %v390_v54  ;;  %661 = vmatpush.msra.mxu0 %v40_v55  ;;  %v279_v53 = vld [vmem:[%s3138_s1 + $0x7f8] sm:$0xff]  ;;  %v398_v54 = vld [vmem:[%s3138_s1 + $0xbb0] sm:$0xff]  ;;  %v48_v55 = vld [vmem:[%s3138_s1 + $0xc0] sm:$0xff] }
  0x5f   :  { %681 = vmatpush.msra.mxu1 %v152_v56  ;;  %701 = vmatpush.msra.mxu2 %v264_v57  ;;  %v160_v56 = vld [vmem:[%s3138_s1 + $0x440] sm:$0xff] }
  0x60   :  { %720 = vmatpush.msra.mxu3 %v383_v58  ;;  %662 = vmatpush.msra.mxu0 %v33_v59  ;;  %v272_v57 = vld [vmem:[%s3138_s1 + $0x7c0] sm:$0xff]  ;;  %v391_v58 = vld [vmem:[%s3138_s1 + $0xb78] sm:$0xff]  ;;  %v41_v59 = vld [vmem:[%s3138_s1 + $0x88] sm:$0xff] }
  0x61   :  { %682 = vmatpush.msra.mxu1 %v145_v60  ;;  %702 = vmatpush.msra.mxu2 %v257_v61  ;;  %v153_v60 = vld [vmem:[%s3138_s1 + $0x408] sm:$0xff] }
  0x62   :  { %721 = vmatpush.msra.mxu3 %v376_v62  ;;  %663 = vmatpush.msra.mxu0 %v26_v2  ;;  %v265_v61 = vld [vmem:[%s3138_s1 + $0x788] sm:$0xff]  ;;  %v384_v62 = vld [vmem:[%s3138_s1 + $0xb40] sm:$0xff]  ;;  %v34_v2 = vld [vmem:[%s3138_s1 + $0x50] sm:$0xff] }
  0x63   :  { %683 = vmatpush.msra.mxu1 %v138_v3  ;;  %703 = vmatpush.msra.mxu2 %v250_v4  ;;  %v146_v3 = vld [vmem:[%s3138_s1 + $0x3d0] sm:$0xff] }
  0x64   :  { %722 = vmatpush.msra.mxu3 %v369_v5  ;;  %584 = vmatmul.f32.vlgmr.msrb.gmra.mxu0 %v1735_v63  ;;  %v258_v4 = vld [vmem:[%s3138_s1 + $0x750] sm:$0xff]  ;;  %v377_v5 = vld [vmem:[%s3138_s1 + $0xb08] sm:$0xff] }
  0x65   :  { %604 = vmatmul.f32.vlgmr.msrb.gmra.mxu1 %v1740_v0  ;;  %624 = vmatmul.f32.vlgmr.msrb.gmra.mxu2 %v1745_v1 }
  0x66   :  { %728 = vmatpush.msrb.mxu0 %v132_v6  ;;  %748 = vmatpush.msrb.mxu1 %v244_v8  ;;  %v27_v6 = vld [vmem:[%s3138_s1 + $0x18] sm:$0xff] }
  0x67   :  { %768 = vmatpush.msrb.mxu2 %v356_v9  ;;  %723 = vmatpush.msra.mxu3 %v362_v10  ;;  %v139_v8 = vld [vmem:[%s3138_s1 + $0x398] sm:$0xff]  ;;  %v370_v10 = vld [vmem:[%s3138_s1 + $0xad0] sm:$0xff] }
  0x68   :  { %729 = vmatpush.msrb.mxu0 %v125_v11  ;;  %644 = vmatmul.f32.vlgmr.msrb.gmra.mxu3 %v1768_v7  ;;  %v251_v9 = vld [vmem:[%s3138_s1 + $0x718] sm:$0xff]  ;;  %v133_v11 = vld [vmem:[%s3138_s1 + $0x368] sm:$0xff] }
  0x69   :  { %749 = vmatpush.msrb.mxu1 %v237_v12  ;;  %769 = vmatpush.msrb.mxu2 %v349_v13  ;;  %v245_v12 = vld [vmem:[%s3138_s1 + $0x6e8] sm:$0xff] }
  0x6a   :  { %788 = vmatpush.msrb.mxu3 %v468_v14  ;;  %730 = vmatpush.msrb.mxu0 %v118_v15  ;;  %v357_v13 = vld [vmem:[%s3138_s1 + $0xa68] sm:$0xff]  ;;  %v363_v14 = vld [vmem:[%s3138_s1 + $0xa98] sm:$0xff]  ;;  %v126_v15 = vld [vmem:[%s3138_s1 + $0x330] sm:$0xff] }
  0x6b   :  { %750 = vmatpush.msrb.mxu1 %v230_v16  ;;  %770 = vmatpush.msrb.mxu2 %v342_v17  ;;  %v238_v16 = vld [vmem:[%s3138_s1 + $0x6b0] sm:$0xff] }
  0x6c   :  { %789 = vmatpush.msrb.mxu3 %v461_v18  ;;  %731 = vmatpush.msrb.mxu0 %v111_v19  ;;  %v350_v17 = vld [vmem:[%s3138_s1 + $0xa30] sm:$0xff]  ;;  %v469_v18 = vld [vmem:[%s3138_s1 + $0xde8] sm:$0xff]  ;;  %v119_v19 = vld [vmem:[%s3138_s1 + $0x2f8] sm:$0xff] }
  0x6d   :  { %751 = vmatpush.msrb.mxu1 %v223_v20  ;;  %771 = vmatpush.msrb.mxu2 %v335_v21  ;;  %v231_v20 = vld [vmem:[%s3138_s1 + $0x678] sm:$0xff] }
  0x6e   :  { %790 = vmatpush.msrb.mxu3 %v454_v22  ;;  %732 = vmatpush.msrb.mxu0 %v104_v23  ;;  %v343_v21 = vld [vmem:[%s3138_s1 + $0x9f8] sm:$0xff]  ;;  %v462_v22 = vld [vmem:[%s3138_s1 + $0xdb0] sm:$0xff]  ;;  %v112_v23 = vld [vmem:[%s3138_s1 + $0x2c0] sm:$0xff] }
  0x6f   :  { %752 = vmatpush.msrb.mxu1 %v216_v24  ;;  %772 = vmatpush.msrb.mxu2 %v328_v25  ;;  %v224_v24 = vld [vmem:[%s3138_s1 + $0x640] sm:$0xff] }
  0x70   :  { %791 = vmatpush.msrb.mxu3 %v447_v26  ;;  %733 = vmatpush.msrb.mxu0 %v97_v27  ;;  %v336_v25 = vld [vmem:[%s3138_s1 + $0x9c0] sm:$0xff]  ;;  %v455_v26 = vld [vmem:[%s3138_s1 + $0xd78] sm:$0xff]  ;;  %v105_v27 = vld [vmem:[%s3138_s1 + $0x288] sm:$0xff] }
  0x71   :  { %753 = vmatpush.msrb.mxu1 %v209_v28  ;;  %773 = vmatpush.msrb.mxu2 %v321_v29  ;;  %v217_v28 = vld [vmem:[%s3138_s1 + $0x608] sm:$0xff] }
  0x72   :  { %792 = vmatpush.msrb.mxu3 %v440_v30  ;;  %734 = vmatpush.msrb.mxu0 %v90_v31  ;;  %v329_v29 = vld [vmem:[%s3138_s1 + $0x988] sm:$0xff]  ;;  %v448_v30 = vld [vmem:[%s3138_s1 + $0xd40] sm:$0xff]  ;;  %v98_v31 = vld [vmem:[%s3138_s1 + $0x250] sm:$0xff] }
  0x73   :  { %754 = vmatpush.msrb.mxu1 %v202_v32  ;;  %774 = vmatpush.msrb.mxu2 %v314_v33  ;;  %v210_v32 = vld [vmem:[%s3138_s1 + $0x5d0] sm:$0xff] }
  0x74   :  { %793 = vmatpush.msrb.mxu3 %v433_v34  ;;  %735 = vmatpush.msrb.mxu0 %v83_v35  ;;  %v322_v33 = vld [vmem:[%s3138_s1 + $0x950] sm:$0xff]  ;;  %v441_v34 = vld [vmem:[%s3138_s1 + $0xd08] sm:$0xff]  ;;  %v91_v35 = vld [vmem:[%s3138_s1 + $0x218] sm:$0xff] }
  0x75   :  { %755 = vmatpush.msrb.mxu1 %v195_v36  ;;  %775 = vmatpush.msrb.mxu2 %v307_v37  ;;  %v203_v36 = vld [vmem:[%s3138_s1 + $0x598] sm:$0xff] }
  0x76   :  { %794 = vmatpush.msrb.mxu3 %v426_v38  ;;  %736 = vmatpush.msrb.mxu0 %v76_v39  ;;  %v315_v37 = vld [vmem:[%s3138_s1 + $0x918] sm:$0xff]  ;;  %v434_v38 = vld [vmem:[%s3138_s1 + $0xcd0] sm:$0xff]  ;;  %v84_v39 = vld [vmem:[%s3138_s1 + $0x1e0] sm:$0xff] }
  0x77   :  { %756 = vmatpush.msrb.mxu1 %v188_v40  ;;  %776 = vmatpush.msrb.mxu2 %v300_v41  ;;  %v196_v40 = vld [vmem:[%s3138_s1 + $0x560] sm:$0xff] }
  0x78   :  { %795 = vmatpush.msrb.mxu3 %v419_v42  ;;  %704 = vmatmul.f32.vlgmr.msra.gmra.mxu2 %v1745_v1  ;;  %v308_v41 = vld [vmem:[%s3138_s1 + $0x8e0] sm:$0xff]  ;;  %v427_v42 = vld [vmem:[%s3138_s1 + $0xc98] sm:$0xff] }
  0x79   :  { %737 = vmatpush.msrb.mxu0 %v69_v43  ;;  %757 = vmatpush.msrb.mxu1 %v181_v44  ;;  %v77_v43 = vld [vmem:[%s3138_s1 + $0x1a8] sm:$0xff] }
  0x7a   :  { %777 = vmatpush.msrb.mxu2 %v293_v45  ;;  %796 = vmatpush.msrb.mxu3 %v412_v46  ;;  %v189_v44 = vld [vmem:[%s3138_s1 + $0x528] sm:$0xff]  ;;  %v420_v46 = vld [vmem:[%s3138_s1 + $0xc60] sm:$0xff] }
  0x7b   :  { %664 = vmatmul.f32.vlgmr.msra.gmra.mxu0 %v1735_v63  ;;  %724 = vmatmul.f32.vlgmr.msra.gmra.mxu3 %v1768_v7  ;;  %v301_v45 = vld [vmem:[%s3138_s1 + $0x8a8] sm:$0xff] }
  0x7c   :  { %738 = vmatpush.msrb.mxu0 %v62_v47  ;;  %758 = vmatpush.msrb.mxu1 %v174_v48  ;;  %v70_v47 = vld [vmem:[%s3138_s1 + $0x170] sm:$0xff] }
  0x7d   :  { %778 = vmatpush.msrb.mxu2 %v286_v49  ;;  %797 = vmatpush.msrb.mxu3 %v405_v50  ;;  %v182_v48 = vld [vmem:[%s3138_s1 + $0x4f0] sm:$0xff]  ;;  %v413_v50 = vld [vmem:[%s3138_s1 + $0xc28] sm:$0xff] }
  0x7e   :  { %684 = vmatmul.f32.vlgmr.msra.gmra.mxu1 %v1740_v0  ;;  %739 = vmatpush.msrb.mxu0 %v55_v51  ;;  %v294_v49 = vld [vmem:[%s3138_s1 + $0x870] sm:$0xff]  ;;  %v63_v51 = vld [vmem:[%s3138_s1 + $0x138] sm:$0xff] }
  0x7f   :  { %759 = vmatpush.msrb.mxu1 %v167_v52  ;;  %779 = vmatpush.msrb.mxu2 %v279_v53  ;;  %v175_v52 = vld [vmem:[%s3138_s1 + $0x4b8] sm:$0xff] }
  0x80   :  { %798 = vmatpush.msrb.mxu3 %v398_v54  ;;  %740 = vmatpush.msrb.mxu0 %v48_v55  ;;  %v287_v53 = vld [vmem:[%s3138_s1 + $0x838] sm:$0xff]  ;;  %v406_v54 = vld [vmem:[%s3138_s1 + $0xbf0] sm:$0xff]  ;;  %v56_v55 = vld [vmem:[%s3138_s1 + $0x100] sm:$0xff] }
  0x81   :  { %760 = vmatpush.msrb.mxu1 %v160_v56  ;;  %780 = vmatpush.msrb.mxu2 %v272_v57  ;;  %v168_v56 = vld [vmem:[%s3138_s1 + $0x480] sm:$0xff] }
  0x82   :  { %799 = vmatpush.msrb.mxu3 %v391_v58  ;;  %741 = vmatpush.msrb.mxu0 %v41_v59  ;;  %v280_v57 = vld [vmem:[%s3138_s1 + $0x800] sm:$0xff]  ;;  %v399_v58 = vld [vmem:[%s3138_s1 + $0xbb8] sm:$0xff]  ;;  %v49_v59 = vld [vmem:[%s3138_s1 + $0xc8] sm:$0xff] }
  0x83   :  { %761 = vmatpush.msrb.mxu1 %v153_v60  ;;  %781 = vmatpush.msrb.mxu2 %v265_v61  ;;  %v161_v60 = vld [vmem:[%s3138_s1 + $0x448] sm:$0xff] }
  0x84   :  { %800 = vmatpush.msrb.mxu3 %v384_v62  ;;  %742 = vmatpush.msrb.mxu0 %v34_v2  ;;  %v273_v61 = vld [vmem:[%s3138_s1 + $0x7c8] sm:$0xff]  ;;  %v392_v62 = vld [vmem:[%s3138_s1 + $0xb80] sm:$0xff]  ;;  %v42_v2 = vld [vmem:[%s3138_s1 + $0x90] sm:$0xff] }
  0x85   :  { %762 = vmatpush.msrb.mxu1 %v146_v3  ;;  %782 = vmatpush.msrb.mxu2 %v258_v4  ;;  %v154_v3 = vld [vmem:[%s3138_s1 + $0x410] sm:$0xff] }
  0x86   :  { %801 = vmatpush.msrb.mxu3 %v377_v5  ;;  %743 = vmatpush.msrb.mxu0 %v27_v6  ;;  %v266_v4 = vld [vmem:[%s3138_s1 + $0x790] sm:$0xff]  ;;  %v385_v5 = vld [vmem:[%s3138_s1 + $0xb48] sm:$0xff]  ;;  %v35_v6 = vld [vmem:[%s3138_s1 + $0x58] sm:$0xff] }
  0x87   :  { %763 = vmatpush.msrb.mxu1 %v139_v8  ;;  %783 = vmatpush.msrb.mxu2 %v251_v9  ;;  %v147_v8 = vld [vmem:[%s3138_s1 + $0x3d8] sm:$0xff] }
  0x88   :  { %802 = vmatpush.msrb.mxu3 %v370_v10  ;;  %784 = vmatmul.f32.vlgmr.msrb.gmra.mxu2 %v1745_v1  ;;  %v259_v9 = vld [vmem:[%s3138_s1 + $0x758] sm:$0xff]  ;;  %v378_v10 = vld [vmem:[%s3138_s1 + $0xb10] sm:$0xff] }
  0x89   :  { %808 = vmatpush.msra.mxu0 %v133_v11  ;;  %828 = vmatpush.msra.mxu1 %v245_v12  ;;  %v28_v11 = vld [vmem:[%s3138_s1 + $0x20] sm:$0xff] }
  0x8a   :  { %848 = vmatpush.msra.mxu2 %v357_v13  ;;  %803 = vmatpush.msrb.mxu3 %v363_v14  ;;  %v140_v12 = vld [vmem:[%s3138_s1 + $0x3a0] sm:$0xff]  ;;  %v371_v14 = vld [vmem:[%s3138_s1 + $0xad8] sm:$0xff] }
  0x8b   :  { %744 = vmatmul.f32.vlgmr.msrb.gmra.mxu0 %v1735_v63  ;;  %804 = vmatmul.f32.vlgmr.msrb.gmra.mxu3 %v1768_v7  ;;  %v252_v13 = vld [vmem:[%s3138_s1 + $0x720] sm:$0xff] }
  0x8c   :  { %809 = vmatpush.msra.mxu0 %v126_v15  ;;  %829 = vmatpush.msra.mxu1 %v238_v16  ;;  %v134_v15 = vld [vmem:[%s3138_s1 + $0x370] sm:$0xff] }
  0x8d   :  { %849 = vmatpush.msra.mxu2 %v350_v17  ;;  %868 = vmatpush.msra.mxu3 %v469_v18  ;;  %v246_v16 = vld [vmem:[%s3138_s1 + $0x6f0] sm:$0xff]  ;;  %v364_v18 = vld [vmem:[%s3138_s1 + $0xaa0] sm:$0xff] }
  0x8e   :  { %764 = vmatmul.f32.vlgmr.msrb.gmra.mxu1 %v1740_v0  ;;  %810 = vmatpush.msra.mxu0 %v119_v19  ;;  %v358_v17 = vld [vmem:[%s3138_s1 + $0xa70] sm:$0xff]  ;;  %v127_v19 = vld [vmem:[%s3138_s1 + $0x338] sm:$0xff] }
  0x8f   :  { %830 = vmatpush.msra.mxu1 %v231_v20  ;;  %850 = vmatpush.msra.mxu2 %v343_v21  ;;  %v239_v20 = vld [vmem:[%s3138_s1 + $0x6b8] sm:$0xff] }
  0x90   :  { %869 = vmatpush.msra.mxu3 %v462_v22  ;;  %811 = vmatpush.msra.mxu0 %v112_v23  ;;  %v351_v21 = vld [vmem:[%s3138_s1 + $0xa38] sm:$0xff]  ;;  %v120_v22 = vld [vmem:[%s3138_s1 + $0x300] sm:$0xff] }
  0x91   :  { %831 = vmatpush.msra.mxu1 %v224_v24  ;;  %851 = vmatpush.msra.mxu2 %v336_v25  ;;  %v232_v23 = vld [vmem:[%s3138_s1 + $0x680] sm:$0xff]  ;;  %v463_v24 = vld [vmem:[%s3138_s1 + $0xdb8] sm:$0xff]  ;;  %v225_v25 = vld [vmem:[%s3138_s1 + $0x648] sm:$0xff] }
  0x92   :  { %870 = vmatpush.msra.mxu3 %v455_v26  ;;  %812 = vmatpush.msra.mxu0 %v105_v27  ;;  %v337_v26 = vld [vmem:[%s3138_s1 + $0x9c8] sm:$0xff]  ;;  %v456_v27 = vld [vmem:[%s3138_s1 + $0xd80] sm:$0xff] }
  0x93   :  { %832 = vmatpush.msra.mxu1 %v217_v28  ;;  %852 = vmatpush.msra.mxu2 %v329_v29  ;;  %v218_v28 = vld [vmem:[%s3138_s1 + $0x610] sm:$0xff] }
  0x94   :  { %871 = vmatpush.msra.mxu3 %v448_v30  ;;  %813 = vmatpush.msra.mxu0 %v98_v31  ;;  %v330_v29 = vld [vmem:[%s3138_s1 + $0x990] sm:$0xff]  ;;  %v449_v30 = vld [vmem:[%s3138_s1 + $0xd48] sm:$0xff]  ;;  %v99_v31 = vld [vmem:[%s3138_s1 + $0x258] sm:$0xff] }
  0x95   :  { %833 = vmatpush.msra.mxu1 %v210_v32  ;;  %853 = vmatpush.msra.mxu2 %v322_v33  ;;  %v211_v32 = vld [vmem:[%s3138_s1 + $0x5d8] sm:$0xff] }
  0x96   :  { %872 = vmatpush.msra.mxu3 %v441_v34  ;;  %814 = vmatpush.msra.mxu0 %v91_v35  ;;  %v323_v33 = vld [vmem:[%s3138_s1 + $0x958] sm:$0xff]  ;;  %v442_v34 = vld [vmem:[%s3138_s1 + $0xd10] sm:$0xff]  ;;  %v92_v35 = vld [vmem:[%s3138_s1 + $0x220] sm:$0xff] }
  0x97   :  { %834 = vmatpush.msra.mxu1 %v203_v36  ;;  %854 = vmatpush.msra.mxu2 %v315_v37  ;;  %v204_v36 = vld [vmem:[%s3138_s1 + $0x5a0] sm:$0xff] }
  0x98   :  { %873 = vmatpush.msra.mxu3 %v434_v38  ;;  %815 = vmatpush.msra.mxu0 %v84_v39  ;;  %v316_v37 = vld [vmem:[%s3138_s1 + $0x920] sm:$0xff]  ;;  %v435_v38 = vld [vmem:[%s3138_s1 + $0xcd8] sm:$0xff]  ;;  %v85_v39 = vld [vmem:[%s3138_s1 + $0x1e8] sm:$0xff] }
  0x99   :  { %835 = vmatpush.msra.mxu1 %v196_v40  ;;  %855 = vmatpush.msra.mxu2 %v308_v41  ;;  %v197_v40 = vld [vmem:[%s3138_s1 + $0x568] sm:$0xff] }
  0x9a   :  { %874 = vmatpush.msra.mxu3 %v427_v42  ;;  %816 = vmatpush.msra.mxu0 %v77_v43  ;;  %v309_v41 = vld [vmem:[%s3138_s1 + $0x8e8] sm:$0xff]  ;;  %v428_v42 = vld [vmem:[%s3138_s1 + $0xca0] sm:$0xff]  ;;  %v78_v43 = vld [vmem:[%s3138_s1 + $0x1b0] sm:$0xff] }
  0x9b   :  { %836 = vmatpush.msra.mxu1 %v189_v44  ;;  %856 = vmatpush.msra.mxu2 %v301_v45  ;;  %v190_v44 = vld [vmem:[%s3138_s1 + $0x530] sm:$0xff] }
  0x9c   :  { %875 = vmatpush.msra.mxu3 %v420_v46  ;;  %817 = vmatpush.msra.mxu0 %v70_v47  ;;  %v302_v45 = vld [vmem:[%s3138_s1 + $0x8b0] sm:$0xff]  ;;  %v421_v46 = vld [vmem:[%s3138_s1 + $0xc68] sm:$0xff]  ;;  %v71_v47 = vld [vmem:[%s3138_s1 + $0x178] sm:$0xff] }
  0x9d   :  { %837 = vmatpush.msra.mxu1 %v182_v48  ;;  %857 = vmatpush.msra.mxu2 %v294_v49  ;;  %v183_v48 = vld [vmem:[%s3138_s1 + $0x4f8] sm:$0xff] }
  0x9e   :  { %876 = vmatpush.msra.mxu3 %v413_v50  ;;  %818 = vmatpush.msra.mxu0 %v63_v51  ;;  %v295_v49 = vld [vmem:[%s3138_s1 + $0x878] sm:$0xff]  ;;  %v414_v50 = vld [vmem:[%s3138_s1 + $0xc30] sm:$0xff]  ;;  %v64_v51 = vld [vmem:[%s3138_s1 + $0x140] sm:$0xff] }
  0x9f   :  { %838 = vmatpush.msra.mxu1 %v175_v52  ;;  %858 = vmatpush.msra.mxu2 %v287_v53  ;;  %v176_v52 = vld [vmem:[%s3138_s1 + $0x4c0] sm:$0xff] }
  0xa0   :  { %877 = vmatpush.msra.mxu3 %v406_v54  ;;  %819 = vmatpush.msra.mxu0 %v56_v55  ;;  %v288_v53 = vld [vmem:[%s3138_s1 + $0x840] sm:$0xff]  ;;  %v407_v54 = vld [vmem:[%s3138_s1 + $0xbf8] sm:$0xff]  ;;  %v57_v55 = vld [vmem:[%s3138_s1 + $0x108] sm:$0xff] }
  0xa1   :  { %839 = vmatpush.msra.mxu1 %v168_v56  ;;  %859 = vmatpush.msra.mxu2 %v280_v57  ;;  %v169_v56 = vld [vmem:[%s3138_s1 + $0x488] sm:$0xff] }
  0xa2   :  { %878 = vmatpush.msra.mxu3 %v399_v58  ;;  %820 = vmatpush.msra.mxu0 %v49_v59  ;;  %v281_v57 = vld [vmem:[%s3138_s1 + $0x808] sm:$0xff]  ;;  %v400_v58 = vld [vmem:[%s3138_s1 + $0xbc0] sm:$0xff]  ;;  %v50_v59 = vld [vmem:[%s3138_s1 + $0xd0] sm:$0xff] }
  0xa3   :  { %840 = vmatpush.msra.mxu1 %v161_v60  ;;  %860 = vmatpush.msra.mxu2 %v273_v61  ;;  %v162_v60 = vld [vmem:[%s3138_s1 + $0x450] sm:$0xff] }
  0xa4   :  { %879 = vmatpush.msra.mxu3 %v392_v62  ;;  %821 = vmatpush.msra.mxu0 %v42_v2  ;;  %v274_v61 = vld [vmem:[%s3138_s1 + $0x7d0] sm:$0xff]  ;;  %v393_v62 = vld [vmem:[%s3138_s1 + $0xb88] sm:$0xff]  ;;  %v43_v2 = vld [vmem:[%s3138_s1 + $0x98] sm:$0xff] }
  0xa5   :  { %841 = vmatpush.msra.mxu1 %v154_v3  ;;  %861 = vmatpush.msra.mxu2 %v266_v4  ;;  %v155_v3 = vld [vmem:[%s3138_s1 + $0x418] sm:$0xff] }
  0xa6   :  { %880 = vmatpush.msra.mxu3 %v385_v5  ;;  %822 = vmatpush.msra.mxu0 %v35_v6  ;;  %v267_v4 = vld [vmem:[%s3138_s1 + $0x798] sm:$0xff]  ;;  %v386_v5 = vld [vmem:[%s3138_s1 + $0xb50] sm:$0xff]  ;;  %v36_v6 = vld [vmem:[%s3138_s1 + $0x60] sm:$0xff] }
  0xa7   :  { %842 = vmatpush.msra.mxu1 %v147_v8  ;;  %862 = vmatpush.msra.mxu2 %v259_v9  ;;  %v148_v8 = vld [vmem:[%s3138_s1 + $0x3e0] sm:$0xff] }
  0xa8   :  { %881 = vmatpush.msra.mxu3 %v378_v10  ;;  %823 = vmatpush.msra.mxu0 %v28_v11  ;;  %v260_v9 = vld [vmem:[%s3138_s1 + $0x760] sm:$0xff]  ;;  %v379_v10 = vld [vmem:[%s3138_s1 + $0xb18] sm:$0xff]  ;;  %v29_v11 = vld [vmem:[%s3138_s1 + $0x28] sm:$0xff] }
  0xa9   :  { %843 = vmatpush.msra.mxu1 %v140_v12  ;;  %863 = vmatpush.msra.mxu2 %v252_v13  ;;  %v141_v12 = vld [vmem:[%s3138_s1 + $0x3a8] sm:$0xff] }
  0xaa   :  { %882 = vmatpush.msra.mxu3 %v371_v14  ;;  %864 = vmatmul.f32.vlgmr.msra.gmra.mxu2 %v1745_v1  ;;  %v470_v1 = vld [vmem:[%s3138_s1 + $0xdf0] sm:$0xff]  ;;  %v253_v13 = vld [vmem:[%s3138_s1 + $0x728] sm:$0xff]  ;;  %v372_v14 = vld [vmem:[%s3138_s1 + $0xae0] sm:$0xff] }
  0xab   :  { %888 = vmatpush.msrb.mxu0 %v134_v15  ;;  %908 = vmatpush.msrb.mxu1 %v246_v16  ;;  %v135_v15 = vld [vmem:[%s3138_s1 + $0x378] sm:$0xff] }
  0xac   :  { %928 = vmatpush.msrb.mxu2 %v358_v17  ;;  %883 = vmatpush.msra.mxu3 %v364_v18  ;;  %v247_v16 = vld [vmem:[%s3138_s1 + $0x6f8] sm:$0xff]  ;;  %v365_v18 = vld [vmem:[%s3138_s1 + $0xaa8] sm:$0xff] }
  0xad   :  { %824 = vmatmul.f32.vlgmr.msra.gmra.mxu0 %v1735_v63  ;;  %884 = vmatmul.f32.vlgmr.msra.gmra.mxu3 %v1768_v7  ;;  %v344_v63 = vld [vmem:[%s3138_s1 + $0xa00] sm:$0xff]  ;;  %v113_v7 = vld [vmem:[%s3138_s1 + $0x2c8] sm:$0xff]  ;;  %v359_v17 = vld [vmem:[%s3138_s1 + $0xa78] sm:$0xff] }
  0xae   :  { %889 = vmatpush.msrb.mxu0 %v127_v19  ;;  %909 = vmatpush.msrb.mxu1 %v239_v20  ;;  %v2555_v19 = vld [vmem:[%s3139_s0 + $0x10] sm:$0xff]  ;;  %v128_v20 = vld [vmem:[%s3138_s1 + $0x340] sm:$0xff] }
  0xaf   :  { %929 = vmatpush.msrb.mxu2 %v351_v21  ;;  %948 = vmatpush.msrb.mxu3 %v470_v1  ;;  %v240_v21 = vld [vmem:[%s3138_s1 + $0x6c0] sm:$0xff] }
  0xb0   :  { %844 = vmatmul.f32.vlgmr.msra.gmra.mxu1 %v1740_v0  ;;  %890 = vmatpush.msrb.mxu0 %v120_v22  ;;  %v106_v0 = vld [vmem:[%s3138_s1 + $0x290] sm:$0xff]  ;;  %v352_v1 = vld [vmem:[%s3138_s1 + $0xa40] sm:$0xff] }
  0xb1   :  { %910 = vmatpush.msrb.mxu1 %v232_v23  ;;  %930 = vmatpush.msrb.mxu2 %v344_v63  ;;  %v2570_v22 = vld [vmem:[%s3139_s0] sm:$0xff]  ;;  %v471_v23 = vld [vmem:[%s3138_s1 + $0xdf8] sm:$0xff] }
  0xb2   :  { %949 = vmatpush.msrb.mxu3 %v463_v24  ;;  %891 = vmatpush.msrb.mxu0 %v113_v7  ;;  %v2579_v63 = vld [vmem:[%s3139_s0 + $0x18] sm:$0xff]  ;;  %v121_v24 = vld [vmem:[%s3138_s1 + $0x308] sm:$0xff] }
  0xb3   :  { %911 = vmatpush.msrb.mxu1 %v225_v25  ;;  %931 = vmatpush.msrb.mxu2 %v337_v26  ;;  %v233_v7 = vld [vmem:[%s3138_s1 + $0x688] sm:$0xff]  ;;  %v464_v26 = vld [vmem:[%s3138_s1 + $0xdc0] sm:$0xff] }
  0xb4   :  { %950 = vmatpush.msrb.mxu3 %v456_v27  ;;  %892 = vmatpush.msrb.mxu0 %v106_v0  ;;  %v345_v25 = vld [vmem:[%s3138_s1 + $0xa08] sm:$0xff]  ;;  %v114_v0 = vld [vmem:[%s3138_s1 + $0x2d0] sm:$0xff] }
  0xb5   :  { %912 = vmatpush.msrb.mxu1 %v218_v28  ;;  %932 = vmatpush.msrb.mxu2 %v330_v29  ;;  %v2597_v27 = vld [vmem:[%s3139_s0 + $0x8] sm:$0xff]  ;;  %v226_v28 = vld [vmem:[%s3138_s1 + $0x650] sm:$0xff] }
  0xb6   :  { %951 = vmatpush.msrb.mxu3 %v449_v30  ;;  %893 = vmatpush.msrb.mxu0 %v99_v31  ;;  %v338_v29 = vld [vmem:[%s3138_s1 + $0x9d0] sm:$0xff]  ;;  %v457_v30 = vld [vmem:[%s3138_s1 + $0xd88] sm:$0xff]  ;;  %v107_v31 = vld [vmem:[%s3138_s1 + $0x298] sm:$0xff] }
  0xb7   :  { %913 = vmatpush.msrb.mxu1 %v211_v32  ;;  %933 = vmatpush.msrb.mxu2 %v323_v33  ;;  %v219_v32 = vld [vmem:[%s3138_s1 + $0x618] sm:$0xff] }
  0xb8   :  { %952 = vmatpush.msrb.mxu3 %v442_v34  ;;  %894 = vmatpush.msrb.mxu0 %v92_v35  ;;  %v331_v33 = vld [vmem:[%s3138_s1 + $0x998] sm:$0xff]  ;;  %v450_v34 = vld [vmem:[%s3138_s1 + $0xd50] sm:$0xff]  ;;  %v100_v35 = vld [vmem:[%s3138_s1 + $0x260] sm:$0xff] }
  0xb9   :  { %914 = vmatpush.msrb.mxu1 %v204_v36  ;;  %934 = vmatpush.msrb.mxu2 %v316_v37  ;;  %v212_v36 = vld [vmem:[%s3138_s1 + $0x5e0] sm:$0xff] }
  0xba   :  { %953 = vmatpush.msrb.mxu3 %v435_v38  ;;  %895 = vmatpush.msrb.mxu0 %v85_v39  ;;  %v324_v37 = vld [vmem:[%s3138_s1 + $0x960] sm:$0xff]  ;;  %v443_v38 = vld [vmem:[%s3138_s1 + $0xd18] sm:$0xff]  ;;  %v93_v39 = vld [vmem:[%s3138_s1 + $0x228] sm:$0xff] }
  0xbb   :  { %915 = vmatpush.msrb.mxu1 %v197_v40  ;;  %935 = vmatpush.msrb.mxu2 %v309_v41  ;;  %v205_v40 = vld [vmem:[%s3138_s1 + $0x5a8] sm:$0xff] }
  0xbc   :  { %954 = vmatpush.msrb.mxu3 %v428_v42  ;;  %896 = vmatpush.msrb.mxu0 %v78_v43  ;;  %v317_v41 = vld [vmem:[%s3138_s1 + $0x928] sm:$0xff]  ;;  %v436_v42 = vld [vmem:[%s3138_s1 + $0xce0] sm:$0xff]  ;;  %v86_v43 = vld [vmem:[%s3138_s1 + $0x1f0] sm:$0xff] }
  0xbd   :  { %916 = vmatpush.msrb.mxu1 %v190_v44  ;;  %936 = vmatpush.msrb.mxu2 %v302_v45  ;;  %v198_v44 = vld [vmem:[%s3138_s1 + $0x570] sm:$0xff] }
  0xbe   :  { %955 = vmatpush.msrb.mxu3 %v421_v46  ;;  %897 = vmatpush.msrb.mxu0 %v71_v47  ;;  %v310_v45 = vld [vmem:[%s3138_s1 + $0x8f0] sm:$0xff]  ;;  %v429_v46 = vld [vmem:[%s3138_s1 + $0xca8] sm:$0xff]  ;;  %v79_v47 = vld [vmem:[%s3138_s1 + $0x1b8] sm:$0xff] }
  0xbf   :  { %917 = vmatpush.msrb.mxu1 %v183_v48  ;;  %937 = vmatpush.msrb.mxu2 %v295_v49  ;;  %v191_v48 = vld [vmem:[%s3138_s1 + $0x538] sm:$0xff] }
  0xc0   :  { %956 = vmatpush.msrb.mxu3 %v414_v50  ;;  %898 = vmatpush.msrb.mxu0 %v64_v51  ;;  %v303_v49 = vld [vmem:[%s3138_s1 + $0x8b8] sm:$0xff]  ;;  %v422_v50 = vld [vmem:[%s3138_s1 + $0xc70] sm:$0xff]  ;;  %v72_v51 = vld [vmem:[%s3138_s1 + $0x180] sm:$0xff] }
  0xc1   :  { %918 = vmatpush.msrb.mxu1 %v176_v52  ;;  %938 = vmatpush.msrb.mxu2 %v288_v53  ;;  %v184_v52 = vld [vmem:[%s3138_s1 + $0x500] sm:$0xff] }
  0xc2   :  { %957 = vmatpush.msrb.mxu3 %v407_v54  ;;  %899 = vmatpush.msrb.mxu0 %v57_v55  ;;  %v296_v53 = vld [vmem:[%s3138_s1 + $0x880] sm:$0xff]  ;;  %v415_v54 = vld [vmem:[%s3138_s1 + $0xc38] sm:$0xff]  ;;  %v65_v55 = vld [vmem:[%s3138_s1 + $0x148] sm:$0xff] }
  0xc3   :  { %919 = vmatpush.msrb.mxu1 %v169_v56  ;;  %939 = vmatpush.msrb.mxu2 %v281_v57  ;;  %v177_v56 = vld [vmem:[%s3138_s1 + $0x4c8] sm:$0xff] }
  0xc4   :  { %958 = vmatpush.msrb.mxu3 %v400_v58  ;;  %900 = vmatpush.msrb.mxu0 %v50_v59  ;;  %v289_v57 = vld [vmem:[%s3138_s1 + $0x848] sm:$0xff]  ;;  %v408_v58 = vld [vmem:[%s3138_s1 + $0xc00] sm:$0xff]  ;;  %v58_v59 = vld [vmem:[%s3138_s1 + $0x110] sm:$0xff] }
  0xc5   :  { %920 = vmatpush.msrb.mxu1 %v162_v60  ;;  %940 = vmatpush.msrb.mxu2 %v274_v61  ;;  %v170_v60 = vld [vmem:[%s3138_s1 + $0x490] sm:$0xff] }
  0xc6   :  { %959 = vmatpush.msrb.mxu3 %v393_v62  ;;  %901 = vmatpush.msrb.mxu0 %v43_v2  ;;  %v282_v61 = vld [vmem:[%s3138_s1 + $0x810] sm:$0xff]  ;;  %v401_v62 = vld [vmem:[%s3138_s1 + $0xbc8] sm:$0xff]  ;;  %v51_v2 = vld [vmem:[%s3138_s1 + $0xd8] sm:$0xff] }
  0xc7   :  { %921 = vmatpush.msrb.mxu1 %v155_v3  ;;  %941 = vmatpush.msrb.mxu2 %v267_v4  ;;  %v163_v3 = vld [vmem:[%s3138_s1 + $0x458] sm:$0xff] }
  0xc8   :  { %960 = vmatpush.msrb.mxu3 %v386_v5  ;;  %902 = vmatpush.msrb.mxu0 %v36_v6  ;;  %v275_v4 = vld [vmem:[%s3138_s1 + $0x7d8] sm:$0xff]  ;;  %v394_v5 = vld [vmem:[%s3138_s1 + $0xb90] sm:$0xff]  ;;  %v44_v6 = vld [vmem:[%s3138_s1 + $0xa0] sm:$0xff] }
  0xc9   :  { %922 = vmatpush.msrb.mxu1 %v148_v8  ;;  %942 = vmatpush.msrb.mxu2 %v260_v9  ;;  %v156_v8 = vld [vmem:[%s3138_s1 + $0x420] sm:$0xff] }
  0xca   :  { %961 = vmatpush.msrb.mxu3 %v379_v10  ;;  %903 = vmatpush.msrb.mxu0 %v29_v11  ;;  %v268_v9 = vld [vmem:[%s3138_s1 + $0x7a0] sm:$0xff]  ;;  %v387_v10 = vld [vmem:[%s3138_s1 + $0xb58] sm:$0xff]  ;;  %v37_v11 = vld [vmem:[%s3138_s1 + $0x68] sm:$0xff] }
  0xcb   :  { %923 = vmatpush.msrb.mxu1 %v141_v12  ;;  %943 = vmatpush.msrb.mxu2 %v253_v13  ;;  %v149_v12 = vld [vmem:[%s3138_s1 + $0x3e8] sm:$0xff] }
  0xcc   :  { %962 = vmatpush.msrb.mxu3 %v372_v14  ;;  %944 = vmatmul.f32.vlgmr.msrb.gmra.mxu2 %v2555_v19  ;;  %v261_v13 = vld [vmem:[%s3138_s1 + $0x768] sm:$0xff]  ;;  %v380_v14 = vld [vmem:[%s3138_s1 + $0xb20] sm:$0xff] }
  0xcd   :  { %968 = vmatpush.msra.mxu0 %v135_v15  ;;  %988 = vmatpush.msra.mxu1 %v247_v16  ;;  %v2744_v15 = vpop.f32.mrf.mxu0  ;;  %v30_v16 = vld [vmem:[%s3138_s1 + $0x30] sm:$0xff] }
  0xce   :  { %1008 = vmatpush.msra.mxu2 %v359_v17  ;;  %963 = vmatpush.msrb.mxu3 %v365_v18  ;;  %v142_v17 = vld [vmem:[%s3138_s1 + $0x3b0] sm:$0xff] }
  0xcf   :  { %904 = vmatmul.f32.vlgmr.msrb.gmra.mxu0 %v2570_v22  ;;  %964 = vmatmul.f32.vlgmr.msrb.gmra.mxu3 %v2579_v63  ;;  %v254_v18 = vld [vmem:[%s3138_s1 + $0x730] sm:$0xff] }
  0xd0   :  { %969 = vmatpush.msra.mxu0 %v128_v20  ;;  %989 = vmatpush.msra.mxu1 %v240_v21  ;;  %v373_v20 = vld [vmem:[%s3138_s1 + $0xae8] sm:$0xff]  ;;  %v1070_v21 = vld [vmem:[%s3140_s3 + $0x78] sm:$0xff] }
  0xd1   :  { %1009 = vmatpush.msra.mxu2 %v352_v1  ;;  %1028 = vmatpush.msra.mxu3 %v471_v23  ;;  %v1086_v1 = vld [vmem:[%s3140_s3 + $0xf8] sm:$0xff] }
  0xd2   :  { %924 = vmatmul.f32.vlgmr.msrb.gmra.mxu1 %v2597_v27  ;;  %970 = vmatpush.msra.mxu0 %v121_v24  ;;  %v1102_v23 = vld [vmem:[%s3140_s3 + $0x178] sm:$0xff]  ;;  %v2767_v24 = vpop.f32.mrf.mxu1 }
  0xd3   :  { %990 = vmatpush.msra.mxu1 %v233_v7  ;;  %1010 = vmatpush.msra.mxu2 %v345_v25  ;;  %v366_v7 = vld [vmem:[%s3138_s1 + $0xab0] sm:$0xff] }
  0xd4   :  { %1029 = vmatpush.msra.mxu3 %v464_v26  ;;  %971 = vmatpush.msra.mxu0 %v114_v0  ;;  %v1069_v25 = vld [vmem:[%s3140_s3 + $0x70] sm:$0xff] }
  0xd5   :  { %991 = vmatpush.msra.mxu1 %v226_v28  ;;  %1011 = vmatpush.msra.mxu2 %v338_v29  ;;  %v1085_v26 = vld [vmem:[%s3140_s3 + $0xf0] sm:$0xff]  ;;  %v2786_v28 = vpop.f32.mrf.mxu2 }
  0xd6   :  { %1030 = vmatpush.msra.mxu3 %v457_v30  ;;  %972 = vmatpush.msra.mxu0 %v107_v31  ;;  %v1101_v0 = vld [vmem:[%s3140_s3 + $0x170] sm:$0xff]  ;;  %v1084_v30 = vld [vmem:[%s3140_s3 + $0xe8] sm:$0xff] }
  0xd7   :  { %992 = vmatpush.msra.mxu1 %v219_v32  ;;  %1012 = vmatpush.msra.mxu2 %v331_v33  ;;  %v1100_v31 = vld [vmem:[%s3140_s3 + $0x168] sm:$0xff]  ;;  %v1083_v32 = vld [vmem:[%s3140_s3 + $0xe0] sm:$0xff] }
  0xd8   :  { %1031 = vmatpush.msra.mxu3 %v450_v34  ;;  %973 = vmatpush.msra.mxu0 %v100_v35  ;;  %v1099_v33 = vld [vmem:[%s3140_s3 + $0x160] sm:$0xff]  ;;  %v1066_v34 = vld [vmem:[%s3140_s3 + $0x58] sm:$0xff]  ;;  %v1117_v35 = vld [vmem:[%s3140_s3 + $0x1f0] sm:$0xff] }
  0xd9   :  { %993 = vmatpush.msra.mxu1 %v212_v36  ;;  %1013 = vmatpush.msra.mxu2 %v324_v37  ;;  %v1082_v37 = vld [vmem:[%s3140_s3 + $0xd8] sm:$0xff] }
  0xda   :  { %1032 = vmatpush.msra.mxu3 %v443_v38  ;;  %974 = vmatpush.msra.mxu0 %v93_v39  ;;  %v1098_v38 = vld [vmem:[%s3140_s3 + $0x158] sm:$0xff]  ;;  %v2827_v39 = vld [vmem:[%s3141_s2] sm:$0xff] }
  0xdb   :  { %994 = vmatpush.msra.mxu1 %v205_v40  ;;  %1014 = vmatpush.msra.mxu2 %v317_v41  ;;  %v1065_v40 = vld [vmem:[%s3140_s3 + $0x50] sm:$0xff]  ;;  %v1116_v41 = vld [vmem:[%s3140_s3 + $0x1e8] sm:$0xff] }
  0xdc   :  { %1033 = vmatpush.msra.mxu3 %v436_v42  ;;  %975 = vmatpush.msra.mxu0 %v86_v43  ;;  %v1081_v42 = vld [vmem:[%s3140_s3 + $0xd0] sm:$0xff] }
  0xdd   :  { %995 = vmatpush.msra.mxu1 %v198_v44  ;;  %1015 = vmatpush.msra.mxu2 %v310_v45  ;;  %v1097_v43 = vld [vmem:[%s3140_s3 + $0x150] sm:$0xff]  ;;  %v1064_v44 = vld [vmem:[%s3140_s3 + $0x48] sm:$0xff]  ;;  %v476_v45 = vperm.slane %v2827_v39, 2 }
  0xde   :  { %1034 = vmatpush.msra.mxu3 %v429_v46  ;;  %976 = vmatpush.msra.mxu0 %v79_v47  ;;  %v1115_v46 = vld [vmem:[%s3140_s3 + $0x1e0] sm:$0xff]  ;;  %v474_v47 = vperm.slane %v2827_v39, 0 }
  0xdf   :  { %996 = vmatpush.msra.mxu1 %v191_v48  ;;  %1016 = vmatpush.msra.mxu2 %v303_v49  ;;  %v475_v48 = vperm.slane %v2827_v39, 1 }
  0xe0   :  { %1035 = vmatpush.msra.mxu3 %v422_v50  ;;  %977 = vmatpush.msra.mxu0 %v72_v51  ;;  %v1080_v50 = vld [vmem:[%s3140_s3 + $0xc8] sm:$0xff] }
  0xe1   :  { %997 = vmatpush.msra.mxu1 %v184_v52  ;;  %1017 = vmatpush.msra.mxu2 %v296_v53  ;;  %v585_v29 = vpop.f32.mrf.mxu0  ;;  %v1096_v51 = vld [vmem:[%s3140_s3 + $0x148] sm:$0xff]  ;;  %v1063_v53 = vld [vmem:[%s3140_s3 + $0x40] sm:$0xff] }
  0xe2   :  { %1036 = vmatpush.msra.mxu3 %v415_v54  ;;  %978 = vmatpush.msra.mxu0 %v65_v55  ;;  %v2816_v36 = vpop.f32.mrf.mxu1  ;;  %v1114_v54 = vld [vmem:[%s3140_s3 + $0x1d8] sm:$0xff]  ;;  %v1079_v55 = vld [vmem:[%s3140_s3 + $0xc0] sm:$0xff] }
  0xe3   :  { %998 = vmatpush.msra.mxu1 %v177_v56  ;;  %1018 = vmatpush.msra.mxu2 %v289_v57  ;;  %v1095_v56 = vld [vmem:[%s3140_s3 + $0x140] sm:$0xff]  ;;  %v1062_v57 = vld [vmem:[%s3140_s3 + $0x38] sm:$0xff] }
  0xe4   :  { %1037 = vmatpush.msra.mxu3 %v408_v58  ;;  %979 = vmatpush.msra.mxu0 %v58_v59  ;;  %v1113_v59 = vld [vmem:[%s3140_s3 + $0x1d0] sm:$0xff] }
  0xe5   :  { %999 = vmatpush.msra.mxu1 %v170_v60  ;;  %1019 = vmatpush.msra.mxu2 %v282_v61  ;;  %v506_v60 = vadd.f32 %v2744_v15, %v474_v47  ;;  %v586_v61 = vadd.f32 %v585_v29, %v475_v48  ;;  %v1076_v15 = vld [vmem:[%s3140_s3 + $0xa8] sm:$0xff]  ;;  %v1090_v29 = vld [vmem:[%s3140_s3 + $0x118] sm:$0xff] }
  0xe6   :  { %1038 = vmatpush.msra.mxu3 %v401_v62  ;;  %980 = vmatpush.msra.mxu0 %v51_v2  ;;  %v1078_v2 = vld [vmem:[%s3140_s3 + $0xb8] sm:$0xff] }
  0xe7   :  { %1000 = vmatpush.msra.mxu1 %v163_v3  ;;  %1020 = vmatpush.msra.mxu2 %v275_v4  ;;  %v1094_v3 = vld [vmem:[%s3140_s3 + $0x138] sm:$0xff] }
  0xe8   :  { %1039 = vmatpush.msra.mxu3 %v394_v5  ;;  %981 = vmatpush.msra.mxu0 %v44_v6  ;;  %v2850_v49 = vpop.f32.mrf.mxu2  ;;  %v1061_v5 = vld [vmem:[%s3140_s3 + $0x30] sm:$0xff]  ;;  %v1112_v6 = vld [vmem:[%s3140_s3 + $0x1c8] sm:$0xff] }
  0xe9   :  { %1001 = vmatpush.msra.mxu1 %v156_v8  ;;  %1021 = vmatpush.msra.mxu2 %v268_v9  ;;  %v1077_v8 = vld [vmem:[%s3140_s3 + $0xb0] sm:$0xff] }
  0xea   :  { %1040 = vmatpush.msra.mxu3 %v387_v10  ;;  %982 = vmatpush.msra.mxu0 %v37_v11  ;;  %v1093_v9 = vld [vmem:[%s3140_s3 + $0x130] sm:$0xff]  ;;  %v1060_v10 = vld [vmem:[%s3140_s3 + $0x28] sm:$0xff] }
  0xeb   :  { %1002 = vmatpush.msra.mxu1 %v149_v12  ;;  %1022 = vmatpush.msra.mxu2 %v261_v13  ;;  %v1111_v12 = vld [vmem:[%s3140_s3 + $0x1c0] sm:$0xff]  ;;  %v526_v13 = vadd.f32 %v2767_v24, %v506_v60  ;;  %v1058_v24 = vld [vmem:[%s3140_s3 + $0x18] sm:$0xff]  ;;  %v1132_v60 = vld [vmem:[%s3140_s3 + $0x268] sm:$0xff] }
  0xec   :  { %1041 = vmatpush.msra.mxu3 %v380_v14  ;;  %983 = vmatpush.msra.mxu0 %v30_v16  ;;  %v606_v14 = vadd.f32 %v2816_v36, %v586_v61  ;;  %v1092_v16 = vld [vmem:[%s3140_s3 + $0x128] sm:$0xff]  ;;  %v1107_v36 = vld [vmem:[%s3140_s3 + $0x1a0] sm:$0xff] }
  0xed   :  { %1003 = vmatpush.msra.mxu1 %v142_v17  ;;  %1023 = vmatpush.msra.mxu2 %v254_v18  ;;  %v1059_v18 = vld [vmem:[%s3140_s3 + $0x20] sm:$0xff] }
  0xee   :  { %1042 = vmatpush.msra.mxu3 %v373_v20  ;;  %1024 = vmatmul.f32.vlgmr.msra.gmra.mxu2 %v2555_v19  ;;  %v1068_v19 = vld [vmem:[%s3140_s3 + $0x68] sm:$0xff]  ;;  %v1110_v20 = vld [vmem:[%s3140_s3 + $0x1b8] sm:$0xff]  ;;  %v1131_v61 = vld [vmem:[%s3140_s3 + $0x260] sm:$0xff] }
  0xef   :  { %1171 = vmatpush.msrb.mxu0 %v1070_v21  ;;  %1191 = vmatpush.msrb.mxu1 %v1086_v1  ;;  %v1075_v21 = vld [vmem:[%s3140_s3 + $0xa0] sm:$0xff] }
  0xf0   :  { %1211 = vmatpush.msrb.mxu2 %v1102_v23  ;;  %1043 = vmatpush.msra.mxu3 %v366_v7  ;;  %v1091_v1 = vld [vmem:[%s3140_s3 + $0x120] sm:$0xff]  ;;  %v1109_v7 = vld [vmem:[%s3140_s3 + $0x1b0] sm:$0xff] }
  0xf1   :  { %984 = vmatmul.f32.vlgmr.msra.gmra.mxu0 %v2570_v22  ;;  %1044 = vmatmul.f32.vlgmr.msra.gmra.mxu3 %v2579_v63  ;;  %v1067_v22 = vld [vmem:[%s3140_s3 + $0x60] sm:$0xff]  ;;  %v1118_v63 = vld [vmem:[%s3140_s3 + $0x1f8] sm:$0xff] }
  0xf2   :  { %1172 = vmatpush.msrb.mxu0 %v1069_v25  ;;  %1192 = vmatpush.msrb.mxu1 %v1085_v26  ;;  %v477_v25 = vperm.slane %v2827_v39, 3  ;;  %v546_v26 = vadd.f32 %v2786_v28, %v526_v13  ;;  %v1108_v28 = vld [vmem:[%s3140_s3 + $0x1a8] sm:$0xff] }
  0xf3   :  { %1212 = vmatpush.msrb.mxu2 %v1101_v0  ;;  %1004 = vmatmul.f32.vlgmr.msra.gmra.mxu1 %v2597_v27  ;;  %v2814_v27 = vpop.f32.mrf.mxu3  ;;  %v626_v0 = vadd.f32 %v2850_v49, %v606_v14  ;;  %v1144_v13 = vld [vmem:[%s3140_s3 + $0x2c8] sm:$0xff]  ;;  %v1125_v14 = vld [vmem:[%s3140_s3 + $0x230] sm:$0xff] }
  0xf4   :  { %1173 = vmatpush.msrb.mxu0 %v1068_v19  ;;  %1193 = vmatpush.msrb.mxu1 %v1084_v30  ;;  %v1074_v19 = vld [vmem:[%s3140_s3 + $0x98] sm:$0xff] }
  0xf5   :  { %1213 = vmatpush.msrb.mxu2 %v1100_v31  ;;  %1231 = vmatpush.msrb.mxu3 %v1118_v63  ;;  %v1057_v31 = vld [vmem:[%s3140_s3 + $0x10] sm:$0xff] }
  0xf6   :  { %1174 = vmatpush.msrb.mxu0 %v1067_v22  ;;  %1194 = vmatpush.msrb.mxu1 %v1083_v32  ;;  %v1073_v22 = vld [vmem:[%s3140_s3 + $0x90] sm:$0xff] }
  0xf7   :  { %1214 = vmatpush.msrb.mxu2 %v1099_v33  ;;  %1232 = vmatpush.msrb.mxu3 %v1117_v35  ;;  %v1089_v63 = vld [vmem:[%s3140_s3 + $0x110] sm:$0xff] }
  0xf8   :  { %1175 = vmatpush.msrb.mxu0 %v1066_v34  ;;  %1195 = vmatpush.msrb.mxu1 %v1082_v37  ;;  %v665_v52 = vpop.f32.mrf.mxu0  ;;  %v1056_v34 = vld [vmem:[%s3140_s3 + $0x8] sm:$0xff]  ;;  %v566_v37 = vadd.f32 %v2814_v27, %v546_v26  ;;  %v1106_v27 = vld [vmem:[%s3140_s3 + $0x198] sm:$0xff] }
  0xf9   :  { %1215 = vmatpush.msrb.mxu2 %v1098_v38  ;;  %1233 = vmatpush.msrb.mxu3 %v1116_v41  ;;  %v666_v58 = vadd.f32 %v665_v52, %v476_v45  ;;  %v1088_v41 = vld [vmem:[%s3140_s3 + $0x108] sm:$0xff]  ;;  %v1087_v45 = vld [vmem:[%s3140_s3 + $0x100] sm:$0xff]  ;;  %v1105_v52 = vld [vmem:[%s3140_s3 + $0x190] sm:$0xff] }
  0xfa   :  { %1176 = vmatpush.msrb.mxu0 %v1065_v40  ;;  %1196 = vmatpush.msrb.mxu1 %v1081_v42  ;;  %v1072_v40 = vld [vmem:[%s3140_s3 + $0x88] sm:$0xff]  ;;  %v1055_v42 = vld [vmem:[%s3140_s3] sm:$0xff]  ;;  %v1048_v49 = vmax.f32 %v566_v37, 0.0  ;;  %v1166_v37 = vld [vmem:[%s3140_s3 + $0x378] sm:$0xff] }
  0xfb   :  { %1216 = vmatpush.msrb.mxu2 %v1097_v43  ;;  %1234 = vmatpush.msrb.mxu3 %v1115_v46  ;;  %v2877_v62 = vpop.f32.mrf.mxu3  ;;  %v685_v4 = vpop.f32.mrf.mxu1 }
  0xfc   :  { %1177 = vmatpush.msrb.mxu0 %v1064_v44  ;;  %1197 = vmatpush.msrb.mxu1 %v1080_v50  ;;  %v686_v11 = vadd.f32 %v685_v4, %v666_v58  ;;  %v705_v17 = vpop.f32.mrf.mxu2  ;;  %v646_v38 = vadd.f32 %v2877_v62, %v626_v0  ;;  %v1071_v44 = vld [vmem:[%s3140_s3 + $0x80] sm:$0xff]  ;;  %v1150_v62 = vld [vmem:[%s3140_s3 + $0x2f8] sm:$0xff]  ;;  %v1148_v4 = vld [vmem:[%s3140_s3 + $0x2e8] sm:$0xff] }
  0xfd   :  { %1217 = vmatpush.msrb.mxu2 %v1096_v51  ;;  %1235 = vmatpush.msrb.mxu3 %v1114_v54  ;;  %v1134_v54 = vld [vmem:[%s3140_s3 + $0x278] sm:$0xff]  ;;  %v1119_v0 = vld [vmem:[%s3140_s3 + $0x200] sm:$0xff] }
  0xfe   :  { %1178 = vmatpush.msrb.mxu0 %v1063_v53  ;;  %1198 = vmatpush.msrb.mxu1 %v1079_v55  ;;  %v706_v23 = vadd.f32 %v705_v17, %v686_v11  ;;  %v1049_v50 = vmax.f32 %v646_v38, 0.0  ;;  %v1145_v11 = vld [vmem:[%s3140_s3 + $0x2d0] sm:$0xff]  ;;  %v1142_v17 = vld [vmem:[%s3140_s3 + $0x2b8] sm:$0xff] }
  0xff   :  { %1218 = vmatpush.msrb.mxu2 %v1095_v56  ;;  %1236 = vmatpush.msrb.mxu3 %v1113_v59  ;;  %v1104_v56 = vld [vmem:[%s3140_s3 + $0x188] sm:$0xff]  ;;  %v1103_v59 = vld [vmem:[%s3140_s3 + $0x180] sm:$0xff]  ;;  %v1165_v38 = vld [vmem:[%s3140_s3 + $0x370] sm:$0xff] }
 0x100   :  { %1179 = vmatpush.msrb.mxu0 %v1062_v57  ;;  %1199 = vmatpush.msrb.mxu1 %v1078_v2  ;;  %v1133_v57 = vld [vmem:[%s3140_s3 + $0x270] sm:$0xff] }
 0x101   :  { %1219 = vmatpush.msrb.mxu2 %v1094_v3  ;;  %1237 = vmatpush.msrb.mxu3 %v1112_v6  ;;  %v1149_v2 = vld [vmem:[%s3140_s3 + $0x2f0] sm:$0xff]  ;;  %v1130_v3 = vld [vmem:[%s3140_s3 + $0x258] sm:$0xff]  ;;  %v1147_v6 = vld [vmem:[%s3140_s3 + $0x2e0] sm:$0xff] }
 0x102   :  { %1180 = vmatpush.msrb.mxu0 %v1061_v5  ;;  %1200 = vmatpush.msrb.mxu1 %v1077_v8  ;;  %v1129_v5 = vld [vmem:[%s3140_s3 + $0x250] sm:$0xff]  ;;  %v1128_v8 = vld [vmem:[%s3140_s3 + $0x248] sm:$0xff] }
 0x103   :  { %1220 = vmatpush.msrb.mxu2 %v1093_v9  ;;  %1238 = vmatpush.msrb.mxu3 %v1111_v12  ;;  %v725_v30 = vpop.f32.mrf.mxu3  ;;  %v1146_v9 = vld [vmem:[%s3140_s3 + $0x2d8] sm:$0xff] }
 0x104   :  { %1181 = vmatpush.msrb.mxu0 %v1060_v10  ;;  %1201 = vmatpush.msrb.mxu1 %v1076_v15  ;;  %v726_v33 = vadd.f32 %v725_v30, %v706_v23  ;;  %v1127_v10 = vld [vmem:[%s3140_s3 + $0x240] sm:$0xff]  ;;  %v1126_v12 = vld [vmem:[%s3140_s3 + $0x238] sm:$0xff]  ;;  %v1121_v23 = vld [vmem:[%s3140_s3 + $0x210] sm:$0xff] }
 0x105   :  { %1221 = vmatpush.msrb.mxu2 %v1092_v16  ;;  %1239 = vmatpush.msrb.mxu3 %v1110_v20  ;;  %v1143_v15 = vld [vmem:[%s3140_s3 + $0x2c0] sm:$0xff]  ;;  %v1124_v16 = vld [vmem:[%s3140_s3 + $0x228] sm:$0xff]  ;;  %v1141_v20 = vld [vmem:[%s3140_s3 + $0x2b0] sm:$0xff] }
 0x106   :  { %1182 = vmatpush.msrb.mxu0 %v1059_v18  ;;  %1202 = vmatpush.msrb.mxu1 %v1075_v21  ;;  %v1050_v48 = vmax.f32 %v726_v33, 0.0  ;;  %v1123_v18 = vld [vmem:[%s3140_s3 + $0x220] sm:$0xff]  ;;  %v478_v21 = vperm.slane %v2827_v39, 4 }
 0x107   :  { %1222 = vmatpush.msrb.mxu2 %v1091_v1  ;;  %1240 = vmatpush.msrb.mxu3 %v1109_v7  ;;  %v1122_v1 = vld [vmem:[%s3140_s3 + $0x218] sm:$0xff] }
 0x108   :  { %1183 = vmatpush.msrb.mxu0 %v1058_v24  ;;  %v745_v32 = vpop.f32.mrf.mxu0  ;;  %1203 = vmatpush.msrb.mxu1 %v1074_v19  ;;  %v1140_v19 = vld [vmem:[%s3140_s3 + $0x2a8] sm:$0xff] }
 0x109   :  { %1223 = vmatpush.msrb.mxu2 %v1090_v29  ;;  %v746_v35 = vadd.f32 %v745_v32, %v477_v25  ;;  %1241 = vmatpush.msrb.mxu3 %v1108_v28  ;;  %v1120_v25 = vld [vmem:[%s3140_s3 + $0x208] sm:$0xff]  ;;  %v1139_v28 = vld [vmem:[%s3140_s3 + $0x2a0] sm:$0xff]  ;;  %v1138_v32 = vld [vmem:[%s3140_s3 + $0x298] sm:$0xff] }
 0x10a   :  { %1184 = vmatpush.msrb.mxu0 %v1057_v31  ;;  %1204 = vmatpush.msrb.mxu1 %v1073_v22 }
 0x10b   :  { %1224 = vmatpush.msrb.mxu2 %v1089_v63  ;;  %v765_v43 = vpop.f32.mrf.mxu1  ;;  %1242 = vmatpush.msrb.mxu3 %v1107_v36  ;;  %v785_v47 = vpop.f32.mrf.mxu2  ;;  %v1135_v36 = vld [vmem:[%s3140_s3 + $0x280] sm:$0xff] }
 0x10c   :  { %1185 = vmatpush.msrb.mxu0 %v1056_v34  ;;  %v766_v46 = vadd.f32 %v765_v43, %v746_v35  ;;  %1205 = vmatpush.msrb.mxu1 %v1072_v40  ;;  %v1137_v34 = vld [vmem:[%s3140_s3 + $0x290] sm:$0xff]  ;;  %v1136_v35 = vld [vmem:[%s3140_s3 + $0x288] sm:$0xff] }
 0x10d   :  { %1225 = vmatpush.msrb.mxu2 %v1088_v41  ;;  %1243 = vmatpush.msrb.mxu3 %v1106_v27  ;;  %v1164_v40 = vld [vmem:[%s3140_s3 + $0x368] sm:$0xff]  ;;  %v1163_v41 = vld [vmem:[%s3140_s3 + $0x360] sm:$0xff]  ;;  %v1161_v43 = vld [vmem:[%s3140_s3 + $0x350] sm:$0xff] }
 0x10e   :  { %1186 = vmatpush.msrb.mxu0 %v1055_v42  ;;  %v786_v51 = vadd.f32 %v785_v47, %v766_v46  ;;  %1206 = vmatpush.msrb.mxu1 %v1071_v44  ;;  %v805_v53 = vpop.f32.mrf.mxu3  ;;  %v1162_v42 = vld [vmem:[%s3140_s3 + $0x358] sm:$0xff]  ;;  %v1160_v27 = vld [vmem:[%s3140_s3 + $0x348] sm:$0xff]  ;;  %v1159_v44 = vld [vmem:[%s3140_s3 + $0x340] sm:$0xff]  ;;  %v479_v47 = vperm.slane %v2827_v39, 5 }
 0x10f   :  { %1226 = vmatpush.msrb.mxu2 %v1087_v45  ;;  %1187 = vmatmul.f32.vlgmr.msrb.gmra.mxu0 %v1048_v49  ;;  %v1158_v45 = vld [vmem:[%s3140_s3 + $0x338] sm:$0xff]  ;;  %v1157_v46 = vld [vmem:[%s3140_s3 + $0x330] sm:$0xff] }
 0x110   :  { %1207 = vmatmul.f32.vlgmr.msrb.gmra.mxu1 %v1049_v50  ;;  %v806_v55 = vadd.f32 %v805_v53, %v786_v51  ;;  %1227 = vmatmul.f32.vlgmr.msrb.gmra.mxu2 %v1050_v48  ;;  %v1156_v51 = vld [vmem:[%s3140_s3 + $0x328] sm:$0xff] }
 0x111   :  { %1244 = vmatpush.msrb.mxu3 %v1105_v52  ;;  %1251 = vmatpush.msra.mxu0 %v1134_v54 }
 0x112   :  { %v1051_v58 = vmax.f32 %v806_v55, 0.0  ;;  %1271 = vmatpush.msra.mxu1 %v1150_v62  ;;  %1291 = vmatpush.msra.mxu2 %v1166_v37  ;;  %v1155_v55 = vld [vmem:[%s3140_s3 + $0x320] sm:$0xff] }
 0x113   :  { %1245 = vmatpush.msrb.mxu3 %v1104_v56  ;;  %1252 = vmatpush.msra.mxu0 %v1133_v57  ;;  %v1151_v62 = vld [vmem:[%s3140_s3 + $0x300] sm:$0xff] }
 0x114   :  { %1272 = vmatpush.msra.mxu1 %v1149_v2  ;;  %1292 = vmatpush.msra.mxu2 %v1165_v38  ;;  %v480_v2 = vperm.slane %v2827_v39, 6 }
 0x115   :  { %1246 = vmatpush.msrb.mxu3 %v1103_v59  ;;  %1253 = vmatpush.msra.mxu0 %v1132_v60  ;;  %v1153_v60 = vld [vmem:[%s3140_s3 + $0x310] sm:$0xff] }
 0x116   :  { %1247 = vmatmul.f32.vlgmr.msrb.gmra.mxu3 %v1051_v58  ;;  %1273 = vmatpush.msra.mxu1 %v1148_v4  ;;  %v1154_v58 = vld [vmem:[%s3140_s3 + $0x318] sm:$0xff] }
 0x117   :  { %1254 = vmatpush.msra.mxu0 %v1131_v61  ;;  %1293 = vmatpush.msra.mxu2 %v1164_v40  ;;  %v1152_v61 = vld [vmem:[%s3140_s3 + $0x308] sm:$0xff] }
 0x118   :  { %1274 = vmatpush.msra.mxu1 %v1147_v6 }
 0x119   :  { %1255 = vmatpush.msra.mxu0 %v1130_v3  ;;  %1294 = vmatpush.msra.mxu2 %v1163_v41 }
 0x11a   :  { %1275 = vmatpush.msra.mxu1 %v1146_v9 }
 0x11b   :  { %1256 = vmatpush.msra.mxu0 %v1129_v5  ;;  %1295 = vmatpush.msra.mxu2 %v1162_v42 }
 0x11c   :  { %1276 = vmatpush.msra.mxu1 %v1145_v11 }
 0x11d   :  { %1257 = vmatpush.msra.mxu0 %v1128_v8  ;;  %1296 = vmatpush.msra.mxu2 %v1161_v43 }
 0x11e   :  { %1277 = vmatpush.msra.mxu1 %v1144_v13  ;;  %v1316_v13 = vld [vmem:[%s3142_s4] ss:$0 sm:$0xff] }
 0x11f   :  { %1258 = vmatpush.msra.mxu0 %v1127_v10  ;;  %1297 = vmatpush.msra.mxu2 %v1160_v27 }
 0x120   :  { %1278 = vmatpush.msra.mxu1 %v1143_v15 }
 0x121   :  { %1259 = vmatpush.msra.mxu0 %v1126_v12  ;;  %1298 = vmatpush.msra.mxu2 %v1159_v44 }
 0x122   :  { %1279 = vmatpush.msra.mxu1 %v1142_v17 }
 0x123   :  { %1260 = vmatpush.msra.mxu0 %v1125_v14  ;;  %1299 = vmatpush.msra.mxu2 %v1158_v45 }
 0x124   :  { %1280 = vmatpush.msra.mxu1 %v1141_v20 }
 0x125   :  { %1261 = vmatpush.msra.mxu0 %v1124_v16  ;;  %1300 = vmatpush.msra.mxu2 %v1157_v46 }
 0x126   :  { %1281 = vmatpush.msra.mxu1 %v1140_v19 }
 0x127   :  { %1262 = vmatpush.msra.mxu0 %v1123_v18  ;;  %1301 = vmatpush.msra.mxu2 %v1156_v51 }
 0x128   :  { %1282 = vmatpush.msra.mxu1 %v1139_v28 }
 0x129   :  { %1263 = vmatpush.msra.mxu0 %v1122_v1  ;;  %1302 = vmatpush.msra.mxu2 %v1155_v55 }
 0x12a   :  { %v825_v24 = vpop.f32.mrf.mxu0  ;;  %1283 = vmatpush.msra.mxu1 %v1138_v32 }
 0x12b   :  { %v826_v7 = vadd.f32 %v825_v24, %v478_v21  ;;  %1264 = vmatpush.msra.mxu0 %v1121_v23  ;;  %1303 = vmatpush.msra.mxu2 %v1154_v58 }
 0x12c   :  { %1284 = vmatpush.msra.mxu1 %v1137_v34 }
 0x12d   :  { %v845_v26 = vpop.f32.mrf.mxu1  ;;  %v865_v30 = vpop.f32.mrf.mxu2  ;;  %1265 = vmatpush.msra.mxu0 %v1120_v25  ;;  %1304 = vmatpush.msra.mxu2 %v1153_v60 }
 0x12e   :  { %v846_v29 = vadd.f32 %v845_v26, %v826_v7  ;;  %1285 = vmatpush.msra.mxu1 %v1136_v35 }
 0x12f   :  { %1266 = vmatpush.msra.mxu0 %v1119_v0  ;;  %1305 = vmatpush.msra.mxu2 %v1152_v61 }
 0x130   :  { %v866_v31 = vadd.f32 %v865_v30, %v846_v29  ;;  %v885_v22 = vpop.f32.mrf.mxu3  ;;  %1286 = vmatpush.msra.mxu1 %v1135_v36 }
 0x131   :  { %1306 = vmatpush.msra.mxu2 %v1151_v62 }
 0x132   :  { %v886_v63 = vadd.f32 %v885_v22, %v866_v31 }
 0x134   :  { %v1052_v33 = vmax.f32 %v886_v63, 0.0 }
 0x136   :  { %1267 = vmatmul.f32.vlgmr.msra.gmra.mxu0 %v1052_v33 }
 0x14c   :  { %v905_v48 = vpop.f32.mrf.mxu0 }
 0x14d   :  { %v906_v49 = vadd.f32 %v905_v48, %v479_v47 }
 0x14f   :  { %v925_v50 = vpop.f32.mrf.mxu1  ;;  %v945_v53 = vpop.f32.mrf.mxu2 }
 0x150   :  { %v926_v52 = vadd.f32 %v925_v50, %v906_v49 }
 0x152   :  { %v946_v54 = vadd.f32 %v945_v53, %v926_v52  ;;  %v965_v56 = vpop.f32.mrf.mxu3 }
 0x154   :  { %v966_v57 = vadd.f32 %v965_v56, %v946_v54 }
 0x156   :  { %v1053_v59 = vmax.f32 %v966_v57, 0.0 }
 0x158   :  { %1287 = vmatmul.f32.vlgmr.msra.gmra.mxu1 %v1053_v59 }
 0x16e   :  { %v985_v3 = vpop.f32.mrf.mxu0 }
 0x16f   :  { %v986_v4 = vadd.f32 %v985_v3, %v480_v2 }
 0x170   :  { %v1005_v5 = vpop.f32.mrf.mxu1 }
 0x171   :  { %v1006_v6 = vadd.f32 %v1005_v5, %v986_v4  ;;  %v1025_v8 = vpop.f32.mrf.mxu2 }
 0x173   :  { %v1026_v9 = vadd.f32 %v1025_v8, %v1006_v6 }
 0x174   :  { %v1045_v10 = vpop.f32.mrf.mxu3 }
 0x175   :  { %v1046_v11 = vadd.f32 %v1045_v10, %v1026_v9 }
 0x177   :  { %v1054_v12 = vmax.f32 %v1046_v11, 0.0 }
 0x179   :  { %1307 = vmatmul.f32.vlgmr.msra.gmra.mxu2 %v1054_v12 }
 0x18c   :  { %v1188_v14 = vpop.f32.mrf.mxu0 }
 0x18d   :  { %v1189_v15 = vadd.f32 %v1316_v13, %v1188_v14  ;;  %v1208_v16 = vpop.f32.mrf.mxu1 }
 0x18f   :  { %v1209_v18 = vadd.f32 %v1208_v16, %v1189_v15 }
 0x193   :  { %v1228_v17 = vpop.f32.mrf.mxu2 }
 0x194   :  { %v1229_v20 = vadd.f32 %v1228_v17, %v1209_v18 }
 0x199   :  { %v1248_v39 = vpop.f32.mrf.mxu3 }
 0x19a   :  { %v1249_v1 = vadd.f32 %v1248_v39, %v1229_v20 }
 0x1b3   :  { %v1268_v21 = vpop.f32.mrf.mxu0 }
 0x1b4   :  { %v1269_v24 = vadd.f32 %v1268_v21, %v1249_v1 }
 0x1d5   :  { %v1288_v23 = vpop.f32.mrf.mxu1 }
 0x1d6   :  { %v1289_v7 = vadd.f32 %v1288_v23, %v1269_v24 }
 0x1fc   :  { %v1308_v25 = vpop.f32.mrf.mxu2 }
 0x1fd   :  { %v1309_v26 = vadd.f32 %v1308_v25, %v1289_v7 }
 0x1ff   :  { %1311 = vst [vmem:[%s3143_s5] sm:$0xff] %v1309_v26 }

</bundles_post_ra>
